<compile_context>
chip_gen: v7x
topology: tpu7x:2x2x1
jax: 0.10.0
libtpu: 0.0.40
codegen_flags: <defaults>
</compile_context>

<pallas_src>
import functools

import jax
import jax.numpy as jnp
from jax import lax
from jax.experimental import pallas as pl
from jax.experimental.pallas import tpu as pltpu


def _round_up(x, m):
    return (x + m - 1) // m * m


# ----------------------------- fused Pallas kernel ----------------------------

def _inverted_residual_kernel(*refs, TH_in, TH_out, Wq, Wo_pad, stride,
                              has_expand, use_res, oup):
    if has_expand:
        (x_ref, w1_ref, wdw_ref, s2_ref, b2_ref,
         w3_ref, s3_ref, b3_ref, o_ref) = refs
    else:
        (x_ref, wdw_ref, s2_ref, b2_ref,
         w3_ref, s3_ref, b3_ref, o_ref) = refs

    Cp_hid = wdw_ref.shape[-1]
    Cp_out = o_ref.shape[-1]
    M_in = TH_in * Wq            # rows of the flattened input band
    M_out = TH_out * Wo_pad      # rows of the flattened output band

    # First padded-x row needed by this output row band (includes the 1-row top halo).
    row0 = pl.program_id(1) * (TH_out * stride)
    if (TH_out * stride) % 8 == 0:
        row0 = pl.multiple_of(row0, 8)

    # Input row band (bf16), flattened to (rows*Wq, C). Wq % 16 == 0 so the reshape is a
    # pure re-view and every later row slice lands on an aligned sublane offset.
    x_band = x_ref[0, pl.ds(row0, TH_in)].reshape(M_in, x_ref.shape[-1])

    # ---- expand: 1x1 conv + folded BN + ReLU6 (MXU, bf16 operands / f32 acc) ----
    # BN scale folded into w1; BN bias rides on the indicator channel (1 inside the image,
    # 0 in the zero padding) so padded pixels expand to exactly 0.
    if has_expand:
        h = jnp.dot(x_band, w1_ref[...], preferred_element_type=jnp.float32)
        hid = jnp.clip(h, 0.0, 6.0)
    else:
        hid = x_band.astype(jnp.float32)

    # ---- depthwise 3x3 (stride fused) + BN + ReLU6: shifts on the XLU, FMAs on the VPU --
    # Column taps: circular roll of the flattened band; the >= 1 zero right-padding column
    # makes the wrap-around exact for all real output columns.
    acc = jnp.zeros((TH_out * Wq, Cp_hid), jnp.float32)
    for dj in range(3):
        shift = (1 - dj) % M_in
        shifted = hid if shift == 0 else pltpu.roll(hid, shift, axis=0)
        if stride != 1:
            shifted3 = shifted.reshape(TH_in, Wq, Cp_hid)
        for di in range(3):
            if stride == 1:
                rows = shifted[di * Wq:(di + TH_out) * Wq]          # aligned slice
            else:
                rows = shifted3[di:di + stride * TH_out - 1:stride]  # strided row planes
                rows = rows.reshape(TH_out * Wq, Cp_hid)
            acc = acc + rows * wdw_ref[di * 3 + dj]

    if stride == 2:
        # Even/odd column split: one downsample instead of 9 strided sublane reads.
        acc = acc.reshape(TH_out, Wq // 2, 2, Cp_hid)[:, :, 0, :]
        acc = acc.reshape(M_out, Cp_hid)

    d = jnp.clip(acc * s2_ref[...] + b2_ref[...], 0.0, 6.0)

    # ---- project: 1x1 conv + BN (linear) on the MXU, residual fused ----
    y = jnp.dot(d.astype(jnp.bfloat16), w3_ref[...],
                preferred_element_type=jnp.float32)
    y = y * s3_ref[...] + b3_ref[...]

    if use_res:
        # Residual from the already-loaded x band (aligned slice, no extra DMA).
        res = x_band[Wq:(1 + TH_out) * Wq, :Cp_out].astype(jnp.float32)
        if has_expand:
            # Keep the indicator channel out of the (padded) output channels.
            lane = lax.broadcasted_iota(jnp.int32, res.shape, 1)
            res = jnp.where(lane < oup, res, 0.0)
        y = y + res

    o_ref[0] = y.reshape(TH_out, Wo_pad, Cp_out)


# ------------------------------- module wrapper --------------------------------

def inverted_residual_forward(x_nchw, params, *, inp, oup, stride, expand_ratio):
    """Forward pass of InvertedResidual. Input/output are NCHW (PyTorch convention)."""
    assert stride in (1, 2)
    N, Cin, H, W = x_nchw.shape
    assert Cin == inp
    hidden = int(round(inp * expand_ratio))
    has_expand = expand_ratio != 1
    use_res = (stride == 1) and (inp == oup)

    LANE = 128
    Cp_in = _round_up(inp + (1 if has_expand else 0), LANE)
    Cp_hid = _round_up(hidden, LANE)
    Cp_out = _round_up(oup, LANE)

    Ho = (H - 1) // stride + 1
    Wo = (W - 1) // stride + 1

    # Row tiling: TH_out output rows per grid step. The 2-row input halo comes from the
    # whole lane-padded bf16 image staying resident in VMEM across the row-tile axis.
    TH_out = min(8, Ho)                 # TODO(synk): autotune TH_out against VMEM budget
    R = pl.cdiv(Ho, TH_out)
    Ho_pad = R * TH_out
    TH_in = (TH_out - 1) * stride + 3

    # Width: no left halo (column taps use rolls); >= 1 zero column on the right;
    # multiple of 16 so bf16 reshapes and the stride-2 even/odd split stay aligned.
    Wq = _round_up(W + 1, 16)
    Wo_pad = Wq // stride
    Hp = max(H + 2, (Ho_pad - 1) * stride + 3)

    # NCHW f32 -> NHWC bf16; rows: 1 top halo + zero bottom pad; cols: right pad only;
    # channels: lane padded to a multiple of 128 (+ indicator channel when expanding).
    x = jnp.transpose(x_nchw, (0, 2, 3, 1)).astype(jnp.bfloat16)
    x = jnp.pad(x, ((0, 0), (1, Hp - H - 1), (0, Wq - W), (0, Cp_in - inp)))
    if has_expand:
        x = x.at[:, 1:H + 1, 0:W, inp].set(1.0)
    # TODO(synk): when this block runs inside a full network, keep this lane-padded NHWC
    # bf16 layout between layers to drop the per-call transpose/pad and slice/transpose.

    f32 = jnp.float32

    def _pad_vec(v, c):                 # (1, n) -> (1, c)
        return jnp.pad(v, ((0, 0), (0, c - v.shape[-1]))).astype(f32)

    def _resident(arr):                 # whole array resident across the grid
        nd = arr.ndim
        return pl.BlockSpec(arr.shape, lambda n, r, _nd=nd: (0,) * _nd)

    inputs = [x]
    in_specs = [pl.BlockSpec((1, Hp, Wq, Cp_in), lambda n, r: (n, 0, 0, 0))]

    if has_expand:
        w1_eff = params["w1"] * params["s1"]                 # fold BN scale
        w1p = jnp.zeros((Cp_in, Cp_hid), f32)
        w1p = w1p.at[:inp, :hidden].set(w1_eff)
        w1p = w1p.at[inp, :hidden].set(params["b1"][0])      # fold BN bias (indicator row)
        w1p = w1p.astype(jnp.bfloat16)
        inputs.append(w1p)
        in_specs.append(_resident(w1p))

    wdwp = jnp.pad(params["wdw"].reshape(9, hidden),
                   ((0, 0), (0, Cp_hid - hidden))).astype(f32)
    s2p = _pad_vec(params["s2"].reshape(1, hidden), Cp_hid)
    b2p = _pad_vec(params["b2"].reshape(1, hidden), Cp_hid)
    w3p = jnp.pad(params["w3"],
                  ((0, Cp_hid - hidden), (0, Cp_out - oup))).astype(jnp.bfloat16)
    s3p = _pad_vec(params["s3"], Cp_out)
    b3p = _pad_vec(params["b3"], Cp_out)
    for a in (wdwp, s2p, b2p, w3p, s3p, b3p):
        inputs.append(a)
        in_specs.append(_resident(a))

    kernel = functools.partial(
        _inverted_residual_kernel, TH_in=TH_in, TH_out=TH_out, Wq=Wq, Wo_pad=Wo_pad,
        stride=stride, has_expand=has_expand, use_res=use_res, oup=oup)

    # VMEM budget: pipeline buffers + resident weights + in-kernel temporaries.
    est = (
        2 * Hp * Wq * Cp_in * 2                        # x block (bf16), 2 buffers
        + 2 * TH_out * Wo_pad * Cp_out * 4             # out block (f32), 2 buffers
        + 2 * 2 * (Cp_in * Cp_hid + Cp_hid * Cp_out)   # bf16 matmul weights, 2 buffers
        + 2 * (9 + 4) * Cp_hid * 4 + 2 * 4 * Cp_out * 4
        + TH_in * Wq * Cp_in * 2                       # x band (bf16)
        + 3 * TH_in * Wq * Cp_hid * 4                  # hid + rolled copy + slack
        + 2 * TH_out * Wq * Cp_hid * 4                 # acc + d (f32)
        + TH_out * Wq * Cp_hid * 2                     # d (bf16)
        + 3 * TH_out * Wo_pad * Cp_out * 4             # y + residual + slack
    )
    try:
        cap = int(pltpu.get_tpu_info().vmem_capacity_bytes) * 3 // 4
    except Exception:
        cap = 48 * 2**20
    vmem_limit = int(min(cap, max(32 * 2**20, 2 * est)))

    out = pl.pallas_call(
        kernel,
        out_shape=jax.ShapeDtypeStruct((N, Ho_pad, Wo_pad, Cp_out), jnp.float32),
        grid_spec=pltpu.PrefetchScalarGridSpec(
            num_scalar_prefetch=0,
            grid=(N, R),
            in_specs=in_specs,
            out_specs=pl.BlockSpec((1, TH_out, Wo_pad, Cp_out),
                                   lambda n, r: (n, r, 0, 0)),
        ),
        compiler_params=pltpu.CompilerParams(
            dimension_semantics=("parallel", "parallel"),
            vmem_limit_bytes=vmem_limit),
    )(*inputs)

    y = out[:, :Ho, :Wo, :oup]
    return jnp.transpose(y, (0, 3, 1, 2))   # back to NCHW


# ----------------------------- params & reference -------------------------------

def _fold_bn(gamma, beta, mean, var, eps=1e-5):
    scale = gamma / jnp.sqrt(var + eps)
    bias = beta - mean * scale
    return scale, bias


def init_params(key, inp, oup, expand_ratio):
    hidden = int(round(inp * expand_ratio))
    ks = jax.random.split(key, 16)
    p = {}

    def bn(k0, k1, k2, k3, c):
        gamma = jax.random.uniform(k0, (c,), jnp.float32, 0.5, 1.5)
        beta = 0.1 * jax.random.normal(k1, (c,), jnp.float32)
        mean = 0.1 * jax.random.normal(k2, (c,), jnp.float32)
        var = jax.random.uniform(k3, (c,), jnp.float32, 0.5, 1.5)
        return _fold_bn(gamma, beta, mean, var)

    if expand_ratio != 1:
        # PyTorch weight (hidden, inp, 1, 1) -> kernel layout (inp, hidden)
        p["w1"] = 0.2 * jax.random.normal(ks[0], (inp, hidden), jnp.float32)
        s1, b1 = bn(ks[1], ks[2], ks[3], ks[4], hidden)
        p["s1"], p["b1"] = s1.reshape(1, hidden), b1.reshape(1, hidden)

    # PyTorch weight (hidden, 1, 3, 3) -> kernel layout (9, 1, 1, hidden), k = di*3 + dj
    p["wdw"] = 0.2 * jax.random.normal(ks[5], (9, 1, 1, hidden), jnp.float32)
    s2, b2 = bn(ks[6], ks[7], ks[8], ks[9], hidden)
    p["s2"], p["b2"] = s2.reshape(1, 1, hidden), b2.reshape(1, 1, hidden)

    # PyTorch weight (oup, hidden, 1, 1) -> kernel layout (hidden, oup)
    p["w3"] = 0.2 * jax.random.normal(ks[10], (hidden, oup), jnp.float32)
    s3, b3 = bn(ks[11], ks[12], ks[13], ks[14], oup)
    p["s3"], p["b3"] = s3.reshape(1, oup), b3.reshape(1, oup)
    return p


def reference_forward(x_nchw, params, *, inp, oup, stride, expand_ratio):
    """Pure-JAX NCHW f32 reference using lax convs (mirrors the PyTorch module)."""
    hidden = int(round(inp * expand_ratio))
    dn = ("NCHW", "OIHW", "NCHW")
    h = x_nchw.astype(jnp.float32)
    if expand_ratio != 1:
        w1 = jnp.transpose(params["w1"], (1, 0)).reshape(hidden, inp, 1, 1)
        h = lax.conv_general_dilated(h, w1, (1, 1), "VALID", dimension_numbers=dn)
        h = h * params["s1"].reshape(1, hidden, 1, 1) + params["b1"].reshape(1, hidden, 1, 1)
        h = jnp.clip(h, 0.0, 6.0)
    wdw = jnp.transpose(params["wdw"].reshape(3, 3, hidden), (2, 0, 1)).reshape(hidden, 1, 3, 3)
    h = lax.conv_general_dilated(h, wdw, (stride, stride), ((1, 1), (1, 1)),
                                 dimension_numbers=dn, feature_group_count=hidden)
    h = h * params["s2"].reshape(1, hidden, 1, 1) + params["b2"].reshape(1, hidden, 1, 1)
    h = jnp.clip(h, 0.0, 6.0)
    w3 = jnp.transpose(params["w3"], (1, 0)).reshape(oup, hidden, 1, 1)
    h = lax.conv_general_dilated(h, w3, (1, 1), "VALID", dimension_numbers=dn)
    h = h * params["s3"].reshape(1, oup, 1, 1) + params["b3"].reshape(1, oup, 1, 1)
    if stride == 1 and inp == oup:
        h = h + x_nchw
    return h


# ------------------------------------ main --------------------------------------

if __name__ == "__main__":
    # batch=2, inp=oup=4, spatial=16, stride=1, expand_ratio=4 -> hidden_dim=16,
    # residual connection active (consistent with the module).
    N, INP, OUP, H, W = 2, 4, 4, 16, 16
    STRIDE, EXPAND = 1, 4

    key = jax.random.PRNGKey(0)
    kx, kp = jax.random.split(key)
    x = jax.random.normal(kx, (N, INP, H, W), jnp.float32)
    params = init_params(kp, INP, OUP, EXPAND)

    out = inverted_residual_forward(
        x, params, inp=INP, oup=OUP, stride=STRIDE, expand_ratio=EXPAND)
    out = jax.block_until_ready(out)

    ref = reference_forward(x, params, inp=INP, oup=OUP, stride=STRIDE, expand_ratio=EXPAND)
    ref = jax.block_until_ready(ref)

    if out.shape != ref.shape:
        raise RuntimeError(f"shape mismatch: {out.shape} vs {ref.shape}")
    max_err = float(jnp.max(jnp.abs(out - ref)))
    # bf16 input / bf16 MXU operands (f32 accumulation) -> loose-ish tolerance.
    if not bool(jnp.allclose(out, ref, atol=6e-2, rtol=6e-2)):
        raise RuntimeError(f"numerical mismatch, max abs err = {max_err}")

    print("KERNEL_OK")
</pallas_src>

<mosaic_0001>
module attributes {stable_mosaic.version = 11 : i64} {
  func.func @_inverted_residual_kernel(%arg0: i32, %arg1: i32, %arg2: memref<1x18x32x128xbf16, #tpu.memory_space<vmem>>, %arg3: memref<128x128xbf16, #tpu.memory_space<vmem>>, %arg4: memref<9x128xf32, #tpu.memory_space<vmem>>, %arg5: memref<1x128xf32, #tpu.memory_space<vmem>>, %arg6: memref<1x128xf32, #tpu.memory_space<vmem>>, %arg7: memref<128x128xbf16, #tpu.memory_space<vmem>>, %arg8: memref<1x128xf32, #tpu.memory_space<vmem>>, %arg9: memref<1x128xf32, #tpu.memory_space<vmem>>, %arg10: memref<1x8x32x128xf32, #tpu.memory_space<vmem>>) attributes {dimension_semantics = [#tpu.dimension_semantics<parallel>, #tpu.dimension_semantics<parallel>], iteration_bounds = array<i64: 2, 2>, scalar_prefetch = 0 : i64, scratch_operands = 0 : i64, tpu.core_type = #tpu.core_type<tc>, window_params = [{transform_indices = @transform_0, window_bounds = array<i64: 1, 18, 32, 128>}, {pipeline_mode = #tpu.pipeline_mode<synchronous>, transform_indices = @transform_1, window_bounds = array<i64: 128, 128>}, {pipeline_mode = #tpu.pipeline_mode<synchronous>, transform_indices = @transform_2, window_bounds = array<i64: 9, 128>}, {pipeline_mode = #tpu.pipeline_mode<synchronous>, transform_indices = @transform_3, window_bounds = array<i64: 1, 128>}, {pipeline_mode = #tpu.pipeline_mode<synchronous>, transform_indices = @transform_4, window_bounds = array<i64: 1, 128>}, {pipeline_mode = #tpu.pipeline_mode<synchronous>, transform_indices = @transform_5, window_bounds = array<i64: 128, 128>}, {pipeline_mode = #tpu.pipeline_mode<synchronous>, transform_indices = @transform_6, window_bounds = array<i64: 1, 128>}, {pipeline_mode = #tpu.pipeline_mode<synchronous>, transform_indices = @transform_7, window_bounds = array<i64: 1, 128>}, {transform_indices = @transform_8, window_bounds = array<i64: 1, 8, 32, 128>}]} {
    %c8_i32 = arith.constant 8 : i32
    %0 = arith.muli %arg1, %c8_i32 : i32
    %1 = tpu.assume_multiple %0, 8 : i32
    %c0 = arith.constant 0 : index
    %2 = arith.index_cast %1 : i32 to index
    %c0_0 = arith.constant 0 : index
    %c0_1 = arith.constant 0 : index
    %3 = vector.load %arg2[%c0, %2, %c0_0, %c0_1] : memref<1x18x32x128xbf16, #tpu.memory_space<vmem>>, vector<1x10x32x128xbf16>
    %4 = vector.shape_cast %3 : vector<1x10x32x128xbf16> to vector<10x32x128xbf16>
    %5 = vector.shape_cast %4 : vector<10x32x128xbf16> to vector<320x128xbf16>
    %c0_2 = arith.constant 0 : index
    %c0_3 = arith.constant 0 : index
    %6 = vector.load %arg3[%c0_2, %c0_3] : memref<128x128xbf16, #tpu.memory_space<vmem>>, vector<128x128xbf16>
    %cst = arith.constant dense<0.000000e+00> : vector<320x128xf32>
    %7 = tpu.matmul %5, %6, %cst {dimension_numbers = #tpu.dot_dimension_numbers<[1], [0], [0], [1], [0, 0, 1, 1], [], []>} : vector<320x128xbf16>, vector<128x128xbf16>, vector<320x128xf32> -> vector<320x128xf32>
    %cst_4 = arith.constant 0.000000e+00 : f32
    %cst_5 = arith.constant 6.000000e+00 : f32
    %8 = vector.broadcast %cst_4 : f32 to vector<320x128xf32>
    %9 = arith.maximumf %8, %7 : vector<320x128xf32>
    %10 = vector.broadcast %cst_5 : f32 to vector<320x128xf32>
    %11 = arith.minimumf %10, %9 : vector<320x128xf32>
    %cst_6 = arith.constant 0.000000e+00 : f32
    %12 = vector.broadcast %cst_6 : f32 to vector<256x128xf32>
    %c1_i32 = arith.constant 1 : i32
    %13 = tpu.dynamic_rotate %11 by %c1_i32 dim 0 : vector<320x128xf32>, i32 -> vector<320x128xf32>
    %14 = vector.extract_strided_slice %13 {offsets = [0, 0], sizes = [256, 128], strides = [1, 1]} : vector<320x128xf32> to vector<256x128xf32>
    %c0_7 = arith.constant 0 : index
    %c0_8 = arith.constant 0 : index
    %15 = vector.load %arg4[%c0_7, %c0_8] : memref<9x128xf32, #tpu.memory_space<vmem>>, vector<1x128xf32>
    %16 = vector.shape_cast %15 : vector<1x128xf32> to vector<128xf32>
    %17 = vector.shape_cast %16 : vector<128xf32> to vector<1x128xf32>
    %18 = vector.broadcast %17 : vector<1x128xf32> to vector<256x128xf32>
    %19 = arith.mulf %14, %18 : vector<256x128xf32>
    %20 = arith.addf %12, %19 : vector<256x128xf32>
    %21 = vector.extract_strided_slice %13 {offsets = [32, 0], sizes = [256, 128], strides = [1, 1]} : vector<320x128xf32> to vector<256x128xf32>
    %c3 = arith.constant 3 : index
    %c0_9 = arith.constant 0 : index
    %22 = vector.load %arg4[%c3, %c0_9] : memref<9x128xf32, #tpu.memory_space<vmem>>, vector<1x128xf32>
    %23 = vector.shape_cast %22 : vector<1x128xf32> to vector<128xf32>
    %24 = vector.shape_cast %23 : vector<128xf32> to vector<1x128xf32>
    %25 = vector.broadcast %24 : vector<1x128xf32> to vector<256x128xf32>
    %26 = arith.mulf %21, %25 : vector<256x128xf32>
    %27 = arith.addf %20, %26 : vector<256x128xf32>
    %28 = vector.extract_strided_slice %13 {offsets = [64, 0], sizes = [256, 128], strides = [1, 1]} : vector<320x128xf32> to vector<256x128xf32>
    %c6 = arith.constant 6 : index
    %c0_10 = arith.constant 0 : index
    %29 = vector.load %arg4[%c6, %c0_10] : memref<9x128xf32, #tpu.memory_space<vmem>>, vector<1x128xf32>
    %30 = vector.shape_cast %29 : vector<1x128xf32> to vector<128xf32>
    %31 = vector.shape_cast %30 : vector<128xf32> to vector<1x128xf32>
    %32 = vector.broadcast %31 : vector<1x128xf32> to vector<256x128xf32>
    %33 = arith.mulf %28, %32 : vector<256x128xf32>
    %34 = arith.addf %27, %33 : vector<256x128xf32>
    %35 = vector.extract_strided_slice %11 {offsets = [0, 0], sizes = [256, 128], strides = [1, 1]} : vector<320x128xf32> to vector<256x128xf32>
    %c1 = arith.constant 1 : index
    %c0_11 = arith.constant 0 : index
    %36 = vector.load %arg4[%c1, %c0_11] : memref<9x128xf32, #tpu.memory_space<vmem>>, vector<1x128xf32>
    %37 = vector.shape_cast %36 : vector<1x128xf32> to vector<128xf32>
    %38 = vector.shape_cast %37 : vector<128xf32> to vector<1x128xf32>
    %39 = vector.broadcast %38 : vector<1x128xf32> to vector<256x128xf32>
    %40 = arith.mulf %35, %39 : vector<256x128xf32>
    %41 = arith.addf %34, %40 : vector<256x128xf32>
    %42 = vector.extract_strided_slice %11 {offsets = [32, 0], sizes = [256, 128], strides = [1, 1]} : vector<320x128xf32> to vector<256x128xf32>
    %c4 = arith.constant 4 : index
    %c0_12 = arith.constant 0 : index
    %43 = vector.load %arg4[%c4, %c0_12] : memref<9x128xf32, #tpu.memory_space<vmem>>, vector<1x128xf32>
    %44 = vector.shape_cast %43 : vector<1x128xf32> to vector<128xf32>
    %45 = vector.shape_cast %44 : vector<128xf32> to vector<1x128xf32>
    %46 = vector.broadcast %45 : vector<1x128xf32> to vector<256x128xf32>
    %47 = arith.mulf %42, %46 : vector<256x128xf32>
    %48 = arith.addf %41, %47 : vector<256x128xf32>
    %49 = vector.extract_strided_slice %11 {offsets = [64, 0], sizes = [256, 128], strides = [1, 1]} : vector<320x128xf32> to vector<256x128xf32>
    %c7 = arith.constant 7 : index
    %c0_13 = arith.constant 0 : index
    %50 = vector.load %arg4[%c7, %c0_13] : memref<9x128xf32, #tpu.memory_space<vmem>>, vector<1x128xf32>
    %51 = vector.shape_cast %50 : vector<1x128xf32> to vector<128xf32>
    %52 = vector.shape_cast %51 : vector<128xf32> to vector<1x128xf32>
    %53 = vector.broadcast %52 : vector<1x128xf32> to vector<256x128xf32>
    %54 = arith.mulf %49, %53 : vector<256x128xf32>
    %55 = arith.addf %48, %54 : vector<256x128xf32>
    %c319_i32 = arith.constant 319 : i32
    %56 = tpu.dynamic_rotate %11 by %c319_i32 dim 0 : vector<320x128xf32>, i32 -> vector<320x128xf32>
    %57 = vector.extract_strided_slice %56 {offsets = [0, 0], sizes = [256, 128], strides = [1, 1]} : vector<320x128xf32> to vector<256x128xf32>
    %c2 = arith.constant 2 : index
    %c0_14 = arith.constant 0 : index
    %58 = vector.load %arg4[%c2, %c0_14] : memref<9x128xf32, #tpu.memory_space<vmem>>, vector<1x128xf32>
    %59 = vector.shape_cast %58 : vector<1x128xf32> to vector<128xf32>
    %60 = vector.shape_cast %59 : vector<128xf32> to vector<1x128xf32>
    %61 = vector.broadcast %60 : vector<1x128xf32> to vector<256x128xf32>
    %62 = arith.mulf %57, %61 : vector<256x128xf32>
    %63 = arith.addf %55, %62 : vector<256x128xf32>
    %64 = vector.extract_strided_slice %56 {offsets = [32, 0], sizes = [256, 128], strides = [1, 1]} : vector<320x128xf32> to vector<256x128xf32>
    %c5 = arith.constant 5 : index
    %c0_15 = arith.constant 0 : index
    %65 = vector.load %arg4[%c5, %c0_15] : memref<9x128xf32, #tpu.memory_space<vmem>>, vector<1x128xf32>
    %66 = vector.shape_cast %65 : vector<1x128xf32> to vector<128xf32>
    %67 = vector.shape_cast %66 : vector<128xf32> to vector<1x128xf32>
    %68 = vector.broadcast %67 : vector<1x128xf32> to vector<256x128xf32>
    %69 = arith.mulf %64, %68 : vector<256x128xf32>
    %70 = arith.addf %63, %69 : vector<256x128xf32>
    %71 = vector.extract_strided_slice %56 {offsets = [64, 0], sizes = [256, 128], strides = [1, 1]} : vector<320x128xf32> to vector<256x128xf32>
    %c8 = arith.constant 8 : index
    %c0_16 = arith.constant 0 : index
    %72 = vector.load %arg4[%c8, %c0_16] : memref<9x128xf32, #tpu.memory_space<vmem>>, vector<1x128xf32>
    %73 = vector.shape_cast %72 : vector<1x128xf32> to vector<128xf32>
    %74 = vector.shape_cast %73 : vector<128xf32> to vector<1x128xf32>
    %75 = vector.broadcast %74 : vector<1x128xf32> to vector<256x128xf32>
    %76 = arith.mulf %71, %75 : vector<256x128xf32>
    %77 = arith.addf %70, %76 : vector<256x128xf32>
    %c0_17 = arith.constant 0 : index
    %c0_18 = arith.constant 0 : index
    %78 = vector.load %arg5[%c0_17, %c0_18] : memref<1x128xf32, #tpu.memory_space<vmem>>, vector<1x128xf32>
    %79 = vector.broadcast %78 : vector<1x128xf32> to vector<256x128xf32>
    %80 = arith.mulf %77, %79 : vector<256x128xf32>
    %c0_19 = arith.constant 0 : index
    %c0_20 = arith.constant 0 : index
    %81 = vector.load %arg6[%c0_19, %c0_20] : memref<1x128xf32, #tpu.memory_space<vmem>>, vector<1x128xf32>
    %82 = vector.broadcast %81 : vector<1x128xf32> to vector<256x128xf32>
    %83 = arith.addf %80, %82 : vector<256x128xf32>
    %cst_21 = arith.constant 0.000000e+00 : f32
    %cst_22 = arith.constant 6.000000e+00 : f32
    %84 = vector.broadcast %cst_21 : f32 to vector<256x128xf32>
    %85 = arith.maximumf %84, %83 : vector<256x128xf32>
    %86 = vector.broadcast %cst_22 : f32 to vector<256x128xf32>
    %87 = arith.minimumf %86, %85 : vector<256x128xf32>
    %88 = arith.truncf %87 : vector<256x128xf32> to vector<256x128xbf16>
    %c0_23 = arith.constant 0 : index
    %c0_24 = arith.constant 0 : index
    %89 = vector.load %arg7[%c0_23, %c0_24] : memref<128x128xbf16, #tpu.memory_space<vmem>>, vector<128x128xbf16>
    %cst_25 = arith.constant dense<0.000000e+00> : vector<256x128xf32>
    %90 = tpu.matmul %88, %89, %cst_25 {dimension_numbers = #tpu.dot_dimension_numbers<[1], [0], [0], [1], [0, 0, 1, 1], [], []>} : vector<256x128xbf16>, vector<128x128xbf16>, vector<256x128xf32> -> vector<256x128xf32>
    %c0_26 = arith.constant 0 : index
    %c0_27 = arith.constant 0 : index
    %91 = vector.load %arg8[%c0_26, %c0_27] : memref<1x128xf32, #tpu.memory_space<vmem>>, vector<1x128xf32>
    %92 = vector.broadcast %91 : vector<1x128xf32> to vector<256x128xf32>
    %93 = arith.mulf %90, %92 : vector<256x128xf32>
    %c0_28 = arith.constant 0 : index
    %c0_29 = arith.constant 0 : index
    %94 = vector.load %arg9[%c0_28, %c0_29] : memref<1x128xf32, #tpu.memory_space<vmem>>, vector<1x128xf32>
    %95 = vector.broadcast %94 : vector<1x128xf32> to vector<256x128xf32>
    %96 = arith.addf %93, %95 : vector<256x128xf32>
    %97 = vector.extract_strided_slice %5 {offsets = [32, 0], sizes = [256, 128], strides = [1, 1]} : vector<320x128xbf16> to vector<256x128xbf16>
    %98 = arith.extf %97 : vector<256x128xbf16> to vector<256x128xf32>
    %99 = tpu.iota {dimensions = array<i32: 1>} : vector<256x128xi32>
    %c4_i32 = arith.constant 4 : i32
    %100 = vector.broadcast %c4_i32 : i32 to vector<256x128xi32>
    %101 = arith.cmpi slt, %99, %100 : vector<256x128xi32>
    %cst_30 = arith.constant 0.000000e+00 : f32
    %102 = vector.broadcast %cst_30 : f32 to vector<256x128xf32>
    %103 = arith.select %101, %98, %102 : vector<256x128xi1>, vector<256x128xf32>
    %104 = arith.addf %96, %103 : vector<256x128xf32>
    %105 = vector.shape_cast %104 : vector<256x128xf32> to vector<8x32x128xf32>
    %c0_31 = arith.constant 0 : index
    %c0_32 = arith.constant 0 : index
    %c0_33 = arith.constant 0 : index
    %c0_34 = arith.constant 0 : index
    %106 = vector.load %arg10[%c0_31, %c0_32, %c0_33, %c0_34] : memref<1x8x32x128xf32, #tpu.memory_space<vmem>>, vector<1x8x32x128xf32>
    %107 = vector.shape_cast %106 : vector<1x8x32x128xf32> to vector<8x32x128xf32>
    %108 = vector.shape_cast %105 : vector<8x32x128xf32> to vector<1x8x32x128xf32>
    tpu.vector_store %arg10[%c0_31, %c0_32, %c0_33, %c0_34], %108 {strides = array<i32>} : memref<1x8x32x128xf32, #tpu.memory_space<vmem>>, vector<1x8x32x128xf32>,
    return
  }
  func.func @transform_0(%arg0: i32, %arg1: i32) -> (i32, i32, i32, i32) {
    %c0_i32 = arith.constant 0 : i32
    %c0_i32_0 = arith.constant 0 : i32
    %c0_i32_1 = arith.constant 0 : i32
    %c0_i32_2 = arith.constant 0 : i32
    return %arg0, %c0_i32, %c0_i32_0, %c0_i32_1 : i32, i32, i32, i32
  }
  func.func @transform_1(%arg0: i32, %arg1: i32) -> (i32, i32) {
    %c0_i32 = arith.constant 0 : i32
    %c0_i32_0 = arith.constant 0 : i32
    %c0_i32_1 = arith.constant 0 : i32
    return %c0_i32, %c0_i32_0 : i32, i32
  }
  func.func @transform_2(%arg0: i32, %arg1: i32) -> (i32, i32) {
    %c0_i32 = arith.constant 0 : i32
    %c0_i32_0 = arith.constant 0 : i32
    %c0_i32_1 = arith.constant 0 : i32
    return %c0_i32, %c0_i32_0 : i32, i32
  }
  func.func @transform_3(%arg0: i32, %arg1: i32) -> (i32, i32) {
    %c0_i32 = arith.constant 0 : i32
    %c0_i32_0 = arith.constant 0 : i32
    %c0_i32_1 = arith.constant 0 : i32
    return %c0_i32, %c0_i32_0 : i32, i32
  }
  func.func @transform_4(%arg0: i32, %arg1: i32) -> (i32, i32) {
    %c0_i32 = arith.constant 0 : i32
    %c0_i32_0 = arith.constant 0 : i32
    %c0_i32_1 = arith.constant 0 : i32
    return %c0_i32, %c0_i32_0 : i32, i32
  }
  func.func @transform_5(%arg0: i32, %arg1: i32) -> (i32, i32) {
    %c0_i32 = arith.constant 0 : i32
    %c0_i32_0 = arith.constant 0 : i32
    %c0_i32_1 = arith.constant 0 : i32
    return %c0_i32, %c0_i32_0 : i32, i32
  }
  func.func @transform_6(%arg0: i32, %arg1: i32) -> (i32, i32) {
    %c0_i32 = arith.constant 0 : i32
    %c0_i32_0 = arith.constant 0 : i32
    %c0_i32_1 = arith.constant 0 : i32
    return %c0_i32, %c0_i32_0 : i32, i32
  }
  func.func @transform_7(%arg0: i32, %arg1: i32) -> (i32, i32) {
    %c0_i32 = arith.constant 0 : i32
    %c0_i32_0 = arith.constant 0 : i32
    %c0_i32_1 = arith.constant 0 : i32
    return %c0_i32, %c0_i32_0 : i32, i32
  }
  func.func @transform_8(%arg0: i32, %arg1: i32) -> (i32, i32, i32, i32) {
    %c0_i32 = arith.constant 0 : i32
    %c0_i32_0 = arith.constant 0 : i32
    %c0_i32_1 = arith.constant 0 : i32
    return %arg0, %arg1, %c0_i32, %c0_i32_0 : i32, i32, i32, i32
  }
}

</mosaic_0001>

<bundles_post_ra>
// kernel: tpu_custom_call.1
= control target key start
LH: loop header
LB: loop body
LE: loop exit
PB: predicated region body
PF: predicated region fallthrough
CT: control target
= control target key end

     0   :  { %s5281_s0 = inlined_call_operand.hbm [shape: bf16[2,18,32,128], index: 0, kind: input, shape index: {}]   ;;  %s5282_s1 = inlined_call_operand.hbm [shape: bf16[128,128], index: 1, kind: input, shape index: {}]   ;;  %s5283_s2 = inlined_call_operand.hbm [shape: f32[9,128], index: 2, kind: input, shape index: {}]   ;;  %s5284_s3 = inlined_call_operand.vmem [shape: f32[1,128], index: 3, kind: input, shape index: {}]   ;;  %s5285_s4 = inlined_call_operand.vmem [shape: f32[1,128], index: 4, kind: input, shape index: {}]   ;;  %s5286_s5 = inlined_call_operand.hbm [shape: bf16[128,128], index: 5, kind: input, shape index: {}]   ;;  %s5287_s6 = inlined_call_operand.vmem [shape: f32[1,128], index: 6, kind: input, shape index: {}]   ;;  %s5288_s7 = inlined_call_operand.vmem [shape: f32[1,128], index: 7, kind: input, shape index: {}]   ;;  %s5289_s8 = inlined_call_operand.hbm [shape: f32[2,16,32,128], index: 8, kind: output, shape index: {}]  }
   0x1   :  { %5358 = sst [smem:[#allocation107_spill]] %s5282_s1 }
   0x2   :  { %5359 = sst [smem:[#allocation108_spill]] %s5283_s2 }
   0x3   :  { %5360 = sst [smem:[#allocation109_spill]] %s5286_s5 }
   0x4   :  { %5361 = sst [smem:[#allocation110_spill]] %s5287_s6 }
   0x5   :  { %5362 = sst [smem:[#allocation111_spill]] %s5288_s7 }
   0x6   :  { %5363 = sst [smem:[#allocation112_spill]] %s5289_s8 }
   0x7   :  { %13 = vsyncpa [#allocation3], 0 }
   0x8   :  { %15 = vsyncpa [#allocation3 + $0x1], 0 }
   0x9   :  { %16 = vsyncpa [#allocation6], 0 }
   0xa   :  { %17 = vsyncpa [#allocation9], 0 }
   0xb   :  { %18 = vsyncpa [#allocation4], 0 }
   0xc   :  { %20 = vsyncpa [#allocation4 + $0x1], 0  ;;  %s3145_s27 = smov 0   ;;  %s3147_s28 = smov 0  }
   0xd   :  { %s3149_s29 = smov 0   ;;  %s3151_s30 = smov 0  }
   0xe   :  { %s3153_s9 = smov 0   ;;  %s3155_s10 = smov 0  }
   0xf   :  { %s3157_s11 = smov 0   ;;  %s3159_s12 = smov 0  }
  0x10   :  { %s3161_s13 = smov 0   ;;  %s3163_s14 = smov 0  }
  0x11   :  { %s3165_s15 = smov 0  }
  0x12 LB: > { %5364 = sst [smem:[#allocation15_spill]] %s3047_s27  ;;  %s2397_s16 = sadd.s32 4294967295, %s3087_s15   ;;  %s3087_s15 = sphi %s3165_s15, %s26_s15   ;;  %s3083_s14 = sphi %s3163_s14, %s5646_s14   ;;  %s3079_s13 = sphi %s3161_s13, %s5645_s13   ;;  %s3075_s12 = sphi %s3159_s12, %s5644_s12   ;;  %s3071_s11 = sphi %s3157_s11, %s5643_s11   ;;  %s3067_s10 = sphi %s3155_s10, %s5642_s10   ;;  %s3063_s9 = sphi %s3153_s9, %s5641_s9   ;;  %s3059_s30 = sphi %s3151_s30, %s5640_s30   ;;  %s3055_s29 = sphi %s3149_s29, %s5639_s29   ;;  %s3051_s28 = sphi %s3147_s28, %s5638_s28   ;;  %s3047_s27 = sphi %s3145_s27, %s5635_s27  }
  0x13   : > { %5365 = sst [smem:[#allocation16_spill]] %s3051_s28  ;;  %s2398_s17 = sadd.s32 4294967294, %s3087_s15  }
  0x14   : > { %5366 = sst [smem:[#allocation17_spill]] %s3075_s12  ;;  %p58_p0 = scmp.ne.s32.totalorder %s3063_s9, %s3059_s30 }
  0x15   : > { %p3201_p1 = scmp.eq.s32.totalorder %s2397_s16, 0  ;;  %p230_p2 = scmp.ne.s32.totalorder %s3055_s29, %s3051_s28 }
  0x16   : > { %p231_p4 = scmp.eq.s32.totalorder %s2397_s16, 3  ;;  %p236_p5 = scmp.ne.s32.totalorder %s3051_s28, %s3047_s27 }
  0x17   : > { %s5367_s18 = scalar_select %p3201_p1, 1, 0 }
  0x18   : > { %p3210_p3 = por %p3201_p1, %p58_p0  ;;  %p237_p6 = scmp.eq.s32.totalorder %s2398_s17, 3 }
  0x19   : > { %p3216_p7 = por %p231_p4, %p230_p2  ;;  %p2399_p8 = scmp.ge.s32.totalorder %s3087_s15, 1 }
  0x1a   : > { %s5368_s20 = scalar_select %p3210_p3, 1, 0 }
  0x1b   : > { %s5369_s21 = scalar_select %p3216_p7, 1, 0 }
  0x1c   : > { %p3221_p9 = por %p237_p6, %p236_p5  ;;  %p244_p10 = scmp.lt.s32.totalorder %s3087_s15, 5 }
  0x1d   : > { %5370 = sst [smem:[#allocation18_spill]] %s5369_s21  ;;  %s3089_s24 = smov [#allocation5]  }
  0x1e   : > { %s5371_s22 = scalar_select %p3221_p9, 1, 0 }
  0x1f   : > { %p3226_p11 = pnand %p2399_p8, %p244_p10  ;;  %s256_s25 = sshll.u32 %s3089_s24, 4  ;;  %s257_s25 = int_to_ptr.vmem [resolvable:$true] %s256_s25 }
  0x20   : > { %5372 = sst [smem:[#allocation19_spill]] %s5371_s22  ;;  %s3090_s30 = smov [#allocation7]  }
  0x21   : > { %s5373_s23 = scalar_select %p3226_p11, 1, 0 }
  0x22   : > { %p2647_p12 = pneg %p3226_p11  ;;  %s269_s16 = sshll.u32 %s3090_s30, 4  ;;  %s3238_s16 = int_to_ptr.vmem [resolvable:$true] %s269_s16 }
  0x23   : > { %s5375_s1 = sld [smem:[#allocation107_spill]] }
  0x24   : > { %p3234_p13 = pnand %p2647_p12, %p3201_p1 }
  0x26   : > { %p3248_p2 = pneg %p3234_p13 }
  0x29   : > { %s2843_s22 = scalar_lea.hbm %s5375_s1, 1024 }
  0x2a   : > { %p2844_p0 = scmp.ne.s32.totalorder %s5375_s1, %s2843_s22  ;;  %p2850_p6 = scmp.lt.u32.totalorder %s2843_s22, %s5375_s1 }
  0x2c   : > { %p2846_p4 = pnand %p3248_p2, %p2844_p0 }
  0x2e   : > { %p2847_p5 = pneg %p2846_p4 }
  0x30   : > { %p2852_p8 = pnand %p2850_p6, %p2847_p5 }
  0x32   : > { %2855 = shalt.err (!%p2852_p8)
}
  0x33   : > { %s2856_s19 = scalar_lea.vmem %s257_s25, 1024  ;;  %p2864_p7 = scmp.lt.s32.totalorder %s257_s25, %s257_s25 }
  0x34   : > { %p2857_p10 = scmp.ne.s32.totalorder %s257_s25, %s2856_s19  ;;  %p2865_p1 = scmp.lt.s32.totalorder %s2856_s19, %s2856_s19 }
  0x36   : > { %p2859_p12 = pnand %p2857_p10, %p3248_p2  ;;  %p2866_p3 = por %p2865_p1, %p2864_p7 }
  0x38   : > { %p2860_p9 = pneg %p2859_p12 }
  0x3a   : > { %p2867_p11 = pnand %p2866_p3, %p2860_p9 }
  0x3c   : > { %2870 = shalt.err (!%p2867_p11)
}
  0x3d   : > { %s5302_s8 = smov 64   ;;  %s5304_s27 = smov 4  }
  0x3e   : > { %2650 = dma.hbm_to_vmem [thread:$0]  (!%p3234_p13), %s5375_s1, 1024, %s257_s25, [#allocation6], %s5302_s8, %s5302_s8, %s5304_s27  }
  0x3f   : > { %s5377_s2 = sld [smem:[#allocation108_spill]] }
  0x45   : > { %s2871_s12 = scalar_lea.hbm %s5377_s2, 256 }
  0x46   : > { %p2872_p1 = scmp.ne.s32.totalorder %s5377_s2, %s2871_s12  ;;  %p2878_p9 = scmp.lt.u32.totalorder %s2871_s12, %s5377_s2 }
  0x48   : > { %p2874_p3 = pnand %p2872_p1, %p3248_p2 }
  0x4a   : > { %p2875_p7 = pneg %p2874_p3 }
  0x4c   : > { %p2880_p11 = pnand %p2878_p9, %p2875_p7 }
  0x4e   : > { %2883 = shalt.err (!%p2880_p11)
}
  0x4f   : > { %s2884_s25 = scalar_lea.vmem %s3238_s16, 256  ;;  %p2892_p6 = scmp.lt.s32.totalorder %s3238_s16, %s3238_s16 }
  0x50   : > { %p2885_p0 = scmp.ne.s32.totalorder %s3238_s16, %s2884_s25  ;;  %p2893_p8 = scmp.lt.s32.totalorder %s2884_s25, %s2884_s25 }
  0x52   : > { %p2887_p4 = pnand %p2885_p0, %p3248_p2  ;;  %p2894_p10 = por %p2893_p8, %p2892_p6 }
  0x54   : > { %p2888_p5 = pneg %p2887_p4 }
  0x56   : > { %p2895_p12 = pnand %p2894_p10, %p2888_p5 }
  0x58   : > { %2898 = shalt.err (!%p2895_p12)
}
  0x59   : > { %s3093_s7 = smov 128   ;;  %s3094_s6 = smov 8  }
  0x5a   : > { %2653 = dma.hbm_to_vmem [thread:$0]  (!%p3234_p13), %s5377_s2, 256, %s3238_s16, [#allocation6], %s3093_s7, %s3093_s7, %s3094_s6  }
  0x5b   : > { %s3095_s21 = smov [#allocation8]   ;;  %s5378_s5 = sld [smem:[#allocation109_spill]] }
  0x5c   : > { %s288_s22 = sshll.u32 %s3095_s21, 4  ;;  %s289_s22 = int_to_ptr.vmem [resolvable:$true] %s288_s22 }
  0x61   : > { %s2899_s19 = scalar_lea.hbm %s5378_s5, 1024 }
  0x62   : > { %p2900_p1 = scmp.ne.s32.totalorder %s5378_s5, %s2899_s19  ;;  %p2906_p9 = scmp.lt.u32.totalorder %s2899_s19, %s5378_s5 }
  0x64   : > { %p2902_p3 = pnand %p2900_p1, %p3248_p2 }
  0x66   : > { %p2903_p7 = pneg %p2902_p3 }
  0x68   : > { %p2908_p11 = pnand %p2906_p9, %p2903_p7 }
  0x6a   : > { %2911 = shalt.err (!%p2908_p11)
}
  0x6b   : > { %s2912_s16 = scalar_lea.vmem %s289_s22, 1024  ;;  %p2920_p6 = scmp.lt.s32.totalorder %s289_s22, %s289_s22 }
  0x6c   : > { %p2913_p0 = scmp.ne.s32.totalorder %s289_s22, %s2912_s16  ;;  %p2921_p8 = scmp.lt.s32.totalorder %s2912_s16, %s2912_s16 }
  0x6e   : > { %p2915_p4 = pnand %p2913_p0, %p3248_p2  ;;  %p2922_p10 = por %p2921_p8, %p2920_p6 }
  0x70   : > { %p2916_p5 = pneg %p2915_p4 }
  0x72   : > { %p2923_p12 = pnand %p2922_p10, %p2916_p5 }
  0x74   : > { %2926 = shalt.err (!%p2923_p12)
}
  0x75   : > { %s5379_s8 = smov 4   ;;  %s5380_s7 = smov 64  }
  0x76   : > { %2656 = dma.hbm_to_vmem [thread:$0]  (!%p3234_p13), %s5378_s5, 1024, %s289_s22, [#allocation9], %s5380_s7, %s5380_s7, %s5379_s8  }
  0x77   : > { %s35_s24 = sadd.s32 1, %s3079_s13  ;;  %s38_s26 = sadd.s32 1, %s3083_s14 }
  0x78   : > { %p36_p2 = scmp.ge.s32.totalorder %s35_s24, 2  ;;  %s45_s6 = sadd.s32 1, %s3067_s10 }
  0x79   : > { %p52_p1 = scmp.ne.s32.totalorder %s3067_s10, %s3063_s9  ;;  %p53_p3 = scmp.eq.s32.totalorder %s3087_s15, 0 }
  0x7a   : > { %s5648_s24 = smov (%p36_p2, %s35_s24), 0  ;;  %s5650_s26 = smov (!%p36_p2, %s38_s26), %s3083_s14 }
  0x7b   : > { %5381 = sst [smem:[#allocation20_spill]] %s5648_s24  ;;  %s216_s28 = ssub.s32 %s3079_s13, %s5648_s24 }
  0x7c   : > { %p40_p7 = scmp.ge.s32.totalorder %s5650_s26, 2  ;;  %p2668_p9 = scmp.lt.s32.totalorder %s3087_s15, 4 }
  0x7d   : > { %p3323_p13 = por %p53_p3, %p52_p1  ;;  %s308_s21 = sand.u32 1, %s3067_s10  }
  0x7e   : > { %s5652_s26 = smov (%p40_p7, %s5650_s26), 0  ;;  %s2628_s22 = smul.u32 288, %s308_s21 }
  0x7f   : > { %5383 = sst [smem:[#allocation21_spill]] %s5652_s26  ;;  %s42_s17 = ssub.s32 %s3083_s14, %s5652_s26 }
  0x80   : > { %s2629_s30 = smul.u32 4608, %s3083_s14  ;;  %p43_p11 = scmp.eq.s32.totalorder %s42_s17, 0 }
  0x81   : > { %s217_s19 = sor.u32 %s216_s28, %s42_s17  ;;  %s5384_s16 = sadd.s32 1, %s3055_s29 }
  0x82   : > { %p218_p0 = scmp.eq.s32.totalorder %s217_s19, 0  ;;  %s3344_s5 = scalar_lea.hbm %s5281_s0, %s2629_s30 }
  0x83   : > { %s3334_s25 = scalar_select %p43_p11, %s3067_s10, %s45_s6  }
  0x84   : > { %s3339_s1 = scalar_select %p218_p0, %s3055_s29, %s5384_s16  }
  0x85   : > { %s312_s24 = scalar_lea.vmem [#allocation2], %s2628_s22  ;;  %p3352_p4 = pnand %p2668_p9, %p3323_p13 }
  0x86   : > { %s319_s26 = sshll.u32 %s312_s24, 4  ;;  %s3356_s28 = scalar_lea.sflag [#allocation3], %s308_s21  ;;  %s3346_s26 = int_to_ptr.vmem [resolvable:$true] %s319_s26 }
  0x87   : > { %s2927_s2 = scalar_lea.hbm %s3344_s5, 4608  ;;  %p2929_p6 = pneg %p3352_p4 }
  0x88   : > { %p2928_p5 = scmp.ne.s32.totalorder %s3344_s5, %s2927_s2  ;;  %s2932_s12 = scalar_lea.hbm %s5281_s0, 9216 }
  0x89   : > { %p2933_p12 = scmp.lt.u32.totalorder %s3344_s5, %s5281_s0  ;;  %p2934_p2 = scmp.lt.u32.totalorder %s2932_s12, %s2927_s2 }
  0x8a   : > { %p2930_p8 = pnand %p2929_p6, %p2928_p5  ;;  %p2936_p3 = scmp.lt.u32.totalorder %s2927_s2, %s3344_s5 }
  0x8b   : > { %p2935_p1 = por %p2934_p2, %p2933_p12 }
  0x8c   : > { %p2931_p10 = pneg %p2930_p8 }
  0x8d   : > { %p2937_p7 = por %p2936_p3, %p2935_p1 }
  0x8f   : > { %p2938_p9 = pnand %p2937_p7, %p2931_p10 }
  0x91   : > { %2941 = shalt.err (!%p2938_p9)
}
  0x92   : > { %s2942_s21 = scalar_lea.vmem %s3346_s26, 4608  ;;  %s3096_s19 = smov [#allocation2]  }
  0x93   : > { %p2943_p13 = scmp.ne.s32.totalorder %s3346_s26, %s2942_s21  ;;  %s2947_s16 = sshll.u32 %s3096_s19, 4  ;;  %s2948_s16 = int_to_ptr.vmem [resolvable:$false] %s2947_s16 }
  0x94   : > { %s2949_s27 = scalar_lea.vmem %s2948_s16, 9216  ;;  %p2950_p5 = scmp.lt.s32.totalorder %s3346_s26, %s2948_s16 }
  0x95   : > { %p2945_p11 = pnand %p2943_p13, %p2929_p6  ;;  %p2951_p8 = scmp.lt.s32.totalorder %s2949_s27, %s2942_s21 }
  0x97   : > { %p2946_p0 = pneg %p2945_p11  ;;  %p2952_p12 = por %p2951_p8, %p2950_p5 }
  0x99   : > { %p2953_p2 = pnand %p2952_p12, %p2946_p0 }
  0x9b   : > { %2956 = shalt.err (!%p2953_p2)
}
  0x9c   : > { %2660 = dma.hbm_to_vmem [thread:$0]  (!%p3352_p4), %s3344_s5, 4608, %s3346_s26, %s3356_s28, %s5380_s7, %s5380_s7, %s5379_s8  }
  0x9d   : > { %p5386_p6 = scmp.ne.s32.totalorder %s5373_s23, 0 }
  0x9f   : > { %331 = sbr.rel (%p5386_p6) target bundleno = 914 (0x392), region = 52 }
  0xa6   : > { %s333_s2 = sand.u32 1, %s3063_s9   ;;  %p5387_p10 = scmp.ne.s32.totalorder %s5368_s20, 0 }
  0xa7   : > { %s2630_s24 = smul.u32 288, %s333_s2  ;;  %s334_s22 = scalar_lea.sflag [#allocation3], %s333_s2 }
  0xa9   : > { %s337_s12 = scalar_lea.vmem [#allocation2], %s2630_s24 }
  0xaa   : > { %3030 = dma.done.wait (%p5387_p10), %s334_s22, 4608  }
  0xab   : > { %3032 = vsyncadd (%p5387_p10), %s334_s22, 4294962688  ;;  %p5388_p1 = scmp.ne.s32.totalorder %s5367_s18, 0 }
  0xad   : > { %3034 = dma.done.wait (%p5388_p1), [#allocation6], 1280  }
  0xae   : > { %3036 = vsyncadd (%p5388_p1), [#allocation6], 4294966016 }
  0xaf   : > { %3038 = dma.done.wait (%p5388_p1), [#allocation9], 1024  }
  0xb0   : > { %3040 = vsyncadd (%p5388_p1), [#allocation9], 4294966272  ;;  %v2770_v0 = vld [vmem:[#allocation5] sm:$0xff]   ;;  %v2771_v1 = vld [vmem:[#allocation5 + $0x8] sm:$0xff]   ;;  %s2470_s5 = sshll.u32 %s3071_s11, 7  ;;  %v5308_v28 = vlaneseq  ;;  %s5624_s26 = sld [smem:[#allocation16_spill]] }
  0xb1   : > { %2524 = vmatprep.subr.bf16.mxu0 %v2770_v0  ;;  %v2772_v2 = vld [vmem:[#allocation5 + $0x10] sm:$0xff]   ;;  %s3403_s20 = scalar_lea.vmem %s337_s12, %s2470_s5 [#allocation2]  ;;  %v2773_v3 = vld [vmem:[#allocation5 + $0x18] sm:$0xff]   ;;  %v2774_v5 = vld [vmem:[#allocation5 + $0x20] sm:$0xff]   ;;  %s5626_s30 = sld [smem:[#allocation110_spill]] }
  0xb2   : > { %2525 = vmatpush3.bf16.msra.mxu0 %v2770_v0  ;;  %v2778_v4 = vld [vmem:[%s3403_s20] sm:$0xff]   ;;  %v2775_v6 = vld [vmem:[#allocation5 + $0x28] sm:$0xff]   ;;  %v2776_v7 = vld [vmem:[#allocation5 + $0x30] sm:$0xff]   ;;  %v3426_v34 = vshrl.u32 %v5308_v28, 7  ;;  %s5627_s16 = sld [smem:[#allocation111_spill]]  ;;  %s5628_s24 = sld [smem:[#allocation17_spill]] }
  0xb3   : > { %2526 = vmatprep.subr.bf16.mxu0 %v2771_v1  ;;  %2540 = vmatprep.mubr.bf16.mxu0 %v2778_v4  ;;  %v2777_v8 = vld [vmem:[#allocation5 + $0x38] sm:$0xff]   ;;  %v392_v9 = vld [vmem:[%s3403_s20 + $0x10] sm:$0xff]   ;;  %v2779_v10 = vld [vmem:[%s3403_s20 + $0x8] sm:$0xff]   ;;  %s2471_s22 = sshll.u32 %s3071_s11, 5  ;;  %s5630_s7 = sld [smem:[#allocation112_spill]] }
  0xb4   : > { %v394_v11 = vld [vmem:[%s3403_s20 + $0x18] sm:$0xff]   ;;  %v396_v12 = vld [vmem:[%s3403_s20 + $0x20] sm:$0xff]   ;;  %v398_v13 = vld [vmem:[%s3403_s20 + $0x28] sm:$0xff]   ;;  %vm927_vm0 = vcmp.lt.s32.totalorder %v3426_v34, 1  ;;  %vm1422_vm1 = vcmp.lt.s32.totalorder %v3426_v34, 7  ;;  %s3097_s21 = smov [#allocation10]  }
  0xb5   : > { %v400_v14 = vld [vmem:[%s3403_s20 + $0x30] sm:$0xff]   ;;  %v402_v15 = vld [vmem:[%s3403_s20 + $0x38] sm:$0xff]   ;;  %v404_v16 = vld [vmem:[%s3403_s20 + $0x40] sm:$0xff]   ;;  %s2961_s19 = sshll.u32 %s3097_s21, 4  ;;  %s2962_s19 = int_to_ptr.vmem [resolvable:$false] %s2961_s19 }
  0xb6   : > { %2527 = vmatpush3.bf16.msra.mxu0 %v2771_v1  ;;  %v406_v17 = vld [vmem:[%s3403_s20 + $0x48] sm:$0xff]   ;;  %v408_v18 = vld [vmem:[%s3403_s20 + $0x50] sm:$0xff]   ;;  %v410_v19 = vld [vmem:[%s3403_s20 + $0x58] sm:$0xff]   ;;  %s379_s6 = sand.u32 1, %s5624_s26  }
  0xb7   : > { %2528 = vmatprep.subr.bf16.mxu0 %v2772_v2  ;;  %v412_v20 = vld [vmem:[%s3403_s20 + $0x60] sm:$0xff]   ;;  %v414_v21 = vld [vmem:[%s3403_s20 + $0x68] sm:$0xff]   ;;  %v416_v22 = vld [vmem:[%s3403_s20 + $0x70] sm:$0xff]   ;;  %s2409_s27 = sshll.u32 %s379_s6, 8  ;;  %s5220_s17 = scalar_lea.sflag [#allocation4], %s379_s6 }
  0xb8   : > { %v418_v23 = vld [vmem:[%s3403_s20 + $0x78] sm:$0xff]   ;;  %v420_v24 = vld [vmem:[%s3403_s20 + $0x80] sm:$0xff]   ;;  %v422_v25 = vld [vmem:[%s3403_s20 + $0x88] sm:$0xff]   ;;  %s5050_s2 = scalar_lea.vmem [#allocation10], %s2409_s27  ;;  %s2465_s12 = sshll.u32 %s5628_s24, 6 }
  0xb9   : > { %v2796_v26 = vld [vmem:[%s3403_s20 + $0x90] sm:$0xff]   ;;  %v2797_v27 = vld [vmem:[%s3403_s20 + $0x98] sm:$0xff]   ;;  %v3433_v50 = vld [vmem:[#allocation7 + $0x1] ss:$0 sm:$0xff]  ;;  %s2276_s11 = sadd.s32 %s2471_s22, %s2465_s12  ;;  %s2279_s5 = sshll.u32 %s5050_s2, 4  ;;  %s5208_s5 = int_to_ptr.vmem [resolvable:$true] %s2279_s5 }
  0xba   : > { %2529 = vmatpush3.bf16.msra.mxu0 %v2772_v2  ;;  %v3446_v59 = vld [vmem:[#allocation7] ss:$0 sm:$0xff]  ;;  %v3448_v60 = vld [vmem:[#allocation7 + $0x2] ss:$0 sm:$0xff]  ;;  %s2466_s18 = sshll.u32 %s2276_s11, 7  ;;  %p2964_p13 = scmp.lt.s32.totalorder %s5208_s5, %s2962_s19 }
  0xbb   : > { %2530 = vmatprep.subr.bf16.mxu0 %v2773_v3  ;;  %s5214_s28 = scalar_lea.hbm %s5630_s7, %s2466_s18 }
  0xbe   : > { %2531 = vmatpush3.bf16.msra.mxu0 %v2773_v3 }
  0xbf   : > { %2532 = vmatprep.subr.bf16.mxu0 %v2774_v5 }
  0xc2   : > { %2533 = vmatpush3.bf16.msra.mxu0 %v2774_v5 }
  0xc3   : > { %2534 = vmatprep.subr.bf16.mxu0 %v2775_v6 }
  0xc6   : > { %2535 = vmatpush3.bf16.msra.mxu0 %v2775_v6 }
  0xc7   : > { %2536 = vmatprep.subr.bf16.mxu0 %v2776_v7 }
  0xca   : > { %2537 = vmatpush3.bf16.msra.mxu0 %v2776_v7 }
  0xcb   : > { %2538 = vmatprep.subr.bf16.mxu0 %v2777_v8 }
  0xce   : > { %2539 = vmatpush3.bf16.msra.mxu0 %v2777_v8 }
  0xd1   : > { %2541 = vmatmul.mubr.bf16.vlgmr.msra.gmra.mrb[0].mxu0 %v2779_v10  ;;  %v3475_v10 = vld [vmem:[#allocation7 + $0x4] ss:$0 sm:$0xff] }
  0xd2   : > { %2544 = vmatprep.mubr.bf16.mxu0 %v392_v9 }
  0xd9   : > { %2545 = vmatmul.mubr.bf16.gmra.mrb[4].mxu0 %v394_v11 }
  0xda   : > { %2548 = vmatprep.mubr.bf16.mxu0 %v396_v12 }
  0xe1   : > { %2549 = vmatmul.mubr.bf16.gmra.mrb[8].mxu0 %v398_v13 }
  0xe2   : > { %2552 = vmatprep.mubr.bf16.mxu0 %v400_v14 }
  0xe9   : > { %2553 = vmatmul.mubr.bf16.gmra.mrb[12].mxu0 %v402_v15 }
  0xea   : > { %2556 = vmatprep.mubr.bf16.mxu0 %v404_v16 }
  0xf1   : > { %2557 = vmatmul.mubr.bf16.gmra.mrb[16].mxu0 %v406_v17 }
  0xf2   : > { %2560 = vmatprep.mubr.bf16.mxu0 %v408_v18 }
  0xf9   : > { %2561 = vmatmul.mubr.bf16.gmra.mrb[20].mxu0 %v410_v19 }
  0xfa   : > { %2564 = vmatprep.mubr.bf16.mxu0 %v412_v20 }
 0x101   : > { %2565 = vmatmul.mubr.bf16.gmra.mrb[24].mxu0 %v414_v21 }
 0x102   : > { %2568 = vmatprep.mubr.bf16.mxu0 %v416_v22 }
 0x109   : > { %2569 = vmatmul.mubr.bf16.gmra.mrb[28].mxu0 %v418_v23 }
 0x10a   : > { %2572 = vmatprep.mubr.bf16.mxu0 %v420_v24 }
 0x111   : > { %2573 = vmatmul.mubr.bf16.gmra.mrb[32].mxu0 %v422_v25 }
 0x112   : > { %2576 = vmatprep.mubr.bf16.mxu0 %v2796_v26  ;;  %v3503_v26 = vld [vmem:[#allocation7 + $0x3] ss:$0 sm:$0xff] }
 0x119   : > { %2577 = vmatmul.mubr.bf16.gmra.mrb[36].mxu0 %v2797_v27 }
 0x1a4   : > { %v2542_v29 = vpop.f32.mrb[0].mxu0 }
 0x1a5   : > { %v807_v30 = vmax.f32 %v2542_v29, 0.0  ;;  %v646_v31 = vpop.f32.mrb[1].mxu0 }
 0x1a6   : > { %v805_v32 = vmax.f32 %v646_v31, 0.0  ;;  %v2543_v33 = vpop.f32.mrb[2].mxu0 }
 0x1a7   : > { %v847_v35 = vmin.f32 %v807_v30, 6.0  ;;  %v808_v36 = vmax.f32 %v2543_v33, 0.0  ;;  %v649_v37 = vpop.f32.mrb[3].mxu0 }
 0x1a8   : > { %v3428_v38 = vmin.f32 %v805_v32, 6.0  ;;  %v806_v39 = vmax.f32 %v649_v37, 0.0 }
 0x1a9   : > { %v848_v40 = vmin.f32 %v808_v36, 6.0  ;;  %v887_v42 = vrot.slane %v847_v35, 7  ;;  %v1384_v43 = vrot.slane %v847_v35, 1  ;;  %v3453_v63 = vmul.f32 %v3433_v50, %v847_v35 }
 0x1aa   : > { %5389 = vst [vmem:[#allocation22_spill] sm:$0xff] %v3428_v38  ;;  %v846_v41 = vmin.f32 %v806_v39, 6.0  ;;  %v5313_v46 = vrot.slane %v3428_v38, 7  ;;  %v5312_v58 = vrot.slane %v3428_v38, 1  ;;  %v3459_v2 = vmul.f32 %v3433_v50, %v3428_v38 }
 0x1ab   : > { %v888_v44 = vrot.slane %v848_v40, 7  ;;  %v1385_v45 = vrot.slane %v848_v40, 1  ;;  %5390 = vst [vmem:[#allocation23_spill] sm:$0xff] %v3453_v63  ;;  %v3467_v7 = vmul.f32 %v3433_v50, %v848_v40 }
 0x1ac   : > { %v886_v47 = vrot.slane %v846_v41, 7  ;;  %v1383_v48 = vrot.slane %v846_v41, 1  ;;  %v2546_v49 = vpop.f32.mrb[4].mxu0  ;;  %5391 = vst [vmem:[#allocation24_spill] sm:$0xff] %v3459_v2  ;;  %v3473_v9 = vmul.f32 %v3433_v50, %v846_v41 }
 0x1ad   : > { %v964_v51 = vsel %vm927_vm0, %v887_v42, %v888_v44  ;;  %v1459_v52 = vsel %vm1422_vm1, %v1384_v43, %v1385_v45  ;;  %v811_v53 = vmax.f32 %v2546_v49, 0.0  ;;  %v662_v54 = vpop.f32.mrb[5].mxu0 }
 0x1ae   : > { %v965_v55 = vsel %vm927_vm0, %v886_v47, %v887_v42  ;;  %v966_v56 = vsel %vm927_vm0, %v5313_v46, %v886_v47  ;;  %v2547_v57 = vpop.f32.mrb[6].mxu0  ;;  %v1460_v61 = vsel %vm1422_vm1, %v1383_v48, %v1384_v43  ;;  %v809_v1 = vmax.f32 %v662_v54, 0.0  ;;  %5393 = vst [vmem:[#allocation26_spill] sm:$0xff] %v3473_v9  ;;  %v3546_v47 = vld [vmem:[#allocation7 + $0x5] ss:$0 sm:$0xff] }
 0x1af   : > { %v665_v62 = vpop.f32.mrb[7].mxu0  ;;  %v3455_v0 = vmin.f32 %v811_v53, 6.0  ;;  %v1461_v3 = vsel %vm1422_vm1, %v5312_v58, %v1383_v48  ;;  %v812_v4 = vmax.f32 %v2547_v57, 0.0  ;;  %v976_v6 = vmul.f32 %v3446_v59, %v964_v51  ;;  %5402 = vst [vmem:[#allocation35_spill] sm:$0xff] %v3546_v47 }
 0x1b0   : > { %v810_v5 = vmax.f32 %v665_v62, 0.0  ;;  %v3470_v8 = vmul.f32 %v3448_v60, %v1459_v52  ;;  %v974_v11 = vmul.f32 %v3446_v59, %v966_v56  ;;  %v3478_v12 = vmin.f32 %v809_v1, 6.0 }
 0x1b1   : > { %v3480_v13 = vmin.f32 %v812_v4, 6.0  ;;  %v975_v15 = vmul.f32 %v3446_v59, %v965_v55  ;;  %v3486_v16 = vmul.f32 %v3448_v60, %v1461_v3  ;;  %v3489_v17 = vmul.f32 %v3448_v60, %v1460_v61 }
 0x1b2   : > { %5392 = vst [vmem:[#allocation25_spill] sm:$0xff] %v3470_v8  ;;  %5394 = vst [vmem:[#allocation27_spill] sm:$0xff] %v3478_v12  ;;  %v3482_v14 = vmin.f32 %v810_v5, 6.0  ;;  %v891_v18 = vrot.slane %v3455_v0, 7  ;;  %v3494_v20 = vmul.f32 %v3433_v50, %v3455_v0  ;;  %v3498_v21 = vmul.f32 %v3475_v10, %v3455_v0 }
 0x1b3   : > { %5395 = vst [vmem:[#allocation28_spill] sm:$0xff] %v3480_v13  ;;  %5397 = vst [vmem:[#allocation30_spill] sm:$0xff] %v3486_v16  ;;  %v889_v22 = vrot.slane %v3478_v12, 7  ;;  %v5310_v23 = vrot.slane %v3478_v12, 1  ;;  %v1388_v25 = vrot.slane %v3455_v0, 1  ;;  %v3507_v27 = vmul.f32 %v3433_v50, %v3478_v12 }
 0x1b4   : > { %5396 = vst [vmem:[#allocation29_spill] sm:$0xff] %v3482_v14  ;;  %5398 = vst [vmem:[#allocation31_spill] sm:$0xff] %v3489_v17  ;;  %v2550_v19 = vpop.f32.mrb[8].mxu0  ;;  %v892_v29 = vrot.slane %v3480_v13, 7  ;;  %v5309_v30 = vrot.slane %v3480_v13, 1  ;;  %v3515_v33 = vmul.f32 %v3475_v10, %v3478_v12  ;;  %v890_v36 = vrot.slane %v3482_v14, 7 }
 0x1b5   : > { %5399 = vst [vmem:[#allocation32_spill] sm:$0xff] %v3494_v20  ;;  %5400 = vst [vmem:[#allocation33_spill] sm:$0xff] %v3498_v21  ;;  %v678_v24 = vpop.f32.mrb[9].mxu0  ;;  %v963_v32 = vsel %vm927_vm0, %v888_v44, %v889_v22  ;;  %v1458_v35 = vsel %vm1422_vm1, %v1385_v45, %v5310_v23  ;;  %v3528_v40 = vmul.f32 %v3433_v50, %v3480_v13  ;;  %v5311_v62 = vrot.slane %v3482_v14, 1  ;;  %v3637_v23 = vld [vmem:[#allocation7 + $0x6] ss:$0 sm:$0xff] }
 0x1b6   : > { %v2551_v31 = vpop.f32.mrb[10].mxu0  ;;  %5401 = vst [vmem:[#allocation34_spill] sm:$0xff] %v3515_v33  ;;  %v960_v39 = vsel %vm927_vm0, %v891_v18, %v892_v29  ;;  %v3532_v41 = vmul.f32 %v3475_v10, %v3480_v13  ;;  %v3536_v42 = vmul.f32 %v3433_v50, %v3482_v14  ;;  %v3539_v43 = vmul.f32 %v3446_v59, %v963_v32  ;;  %v2803_v12 = vld [vmem:[#allocation8 + $0x28] sm:$0xff]  }
 0x1b7   : > { %v681_v37 = vpop.f32.mrb[11].mxu0  ;;  %v1045_v44 = vmul.f32 %v3503_v26, %v960_v39  ;;  %v1455_v45 = vsel %vm1422_vm1, %v1388_v25, %v5309_v30  ;;  %v961_v48 = vsel %vm927_vm0, %v890_v36, %v891_v18  ;;  %v3551_v49 = vmul.f32 %v3503_v26, %v963_v32 }
 0x1b8   : > { %v3554_v51 = vmul.f32 %v3448_v60, %v1458_v35  ;;  %v3557_v52 = vmul.f32 %v3446_v59, %v960_v39  ;;  %v962_v53 = vsel %vm927_vm0, %v889_v22, %v890_v36  ;;  %v3564_v55 = vmul.f32 %v3448_v60, %v1455_v45 }
 0x1b9   : > { %5403 = vst [vmem:[#allocation36_spill] sm:$0xff] %v3551_v49  ;;  %v3561_v54 = vadd.f32 %v1045_v44, %v976_v6  ;;  %v1043_v56 = vmul.f32 %v3503_v26, %v962_v53  ;;  %v1044_v57 = vmul.f32 %v3503_v26, %v961_v48  ;;  %v3569_v61 = vmul.f32 %v3546_v47, %v1455_v45 }
 0x1ba   : > { %5404 = vst [vmem:[#allocation37_spill] sm:$0xff] %v3554_v51  ;;  %5405 = vst [vmem:[#allocation38_spill] sm:$0xff] %v3564_v55  ;;  %v815_v0 = vmax.f32 %v2550_v19, 0.0  ;;  %v813_v1 = vmax.f32 %v678_v24, 0.0  ;;  %v816_v6 = vmax.f32 %v2551_v31, 0.0  ;;  %v814_v18 = vmax.f32 %v681_v37, 0.0 }
 0x1bb   : > { %5406 = vst [vmem:[#allocation39_spill] sm:$0xff] %v3569_v61  ;;  %v3574_v4 = vadd.f32 %v1043_v56, %v974_v11  ;;  %v3576_v5 = vadd.f32 %v1044_v57, %v975_v15  ;;  %v3581_v32 = vmul.f32 %v3446_v59, %v962_v53  ;;  %v3584_v35 = vmul.f32 %v3446_v59, %v961_v48  ;;  %v3588_v19 = vld [vmem:[#allocation7 + $0x7] ss:$0 sm:$0xff]  ;;  %v2798_v57 = vld [vmem:[#allocation8] sm:$0xff]  }
 0x1bc   : > { %v3572_v3 = vpop.f32.mrb[12].mxu0  ;;  %v3586_v36 = vmin.f32 %v815_v0, 6.0  ;;  %v3590_v24 = vmin.f32 %v813_v1, 6.0  ;;  %v3596_v15 = vmul.f32 %v3475_v10, %v3482_v14  ;;  %v3598_v31 = vmin.f32 %v816_v6, 6.0  ;;  %v2799_v0 = vld [vmem:[#allocation8 + $0x8] sm:$0xff]   ;;  %2580 = vmatprep.subr.bf16.mxu1 %v2798_v57 }
 0x1bd   : > { %5407 = vst [vmem:[#allocation40_spill] sm:$0xff] %v3574_v4  ;;  %v3578_v22 = vpop.f32.mrb[13].mxu0  ;;  %v819_v37 = vmax.f32 %v3572_v3, 0.0  ;;  %v3607_v44 = vsel %vm1422_vm1, %v5311_v62, %v1388_v25  ;;  %v3610_v48 = vmin.f32 %v814_v18, 6.0  ;;  %2581 = vmatpush3.bf16.msra.mxu1 %v2798_v57 }
 0x1be   : > { %5408 = vst [vmem:[#allocation41_spill] sm:$0xff] %v3586_v36  ;;  %5409 = vst [vmem:[#allocation42_spill] sm:$0xff] %v3590_v24  ;;  %v3592_v11 = vpop.f32.mrb[14].mxu0  ;;  %v895_v45 = vrot.slane %v3586_v36, 7  ;;  %v817_v53 = vmax.f32 %v3578_v22, 0.0  ;;  %v3616_v1 = vmul.f32 %v3433_v50, %v3586_v36  ;;  %v3620_v3 = vmul.f32 %v3475_v10, %v3586_v36  ;;  %2582 = vmatprep.subr.bf16.mxu1 %v2799_v0 }
 0x1bf   : > { %5410 = vst [vmem:[#allocation43_spill] sm:$0xff] %v3596_v15  ;;  %5411 = vst [vmem:[#allocation44_spill] sm:$0xff] %v3598_v31  ;;  %v3601_v39 = vpop.f32.mrb[15].mxu0  ;;  %v3624_v25 = vmul.f32 %v3588_v19, %v3586_v36  ;;  %v893_v6 = vrot.slane %v3590_v24, 7  ;;  %v3630_v22 = vmul.f32 %v3433_v50, %v3590_v24  ;;  %v3634_v28 = vmul.f32 %v3475_v10, %v3590_v24 }
 0x1c0   : > { %5412 = vst [vmem:[#allocation45_spill] sm:$0xff] %v3607_v44  ;;  %5413 = vst [vmem:[#allocation46_spill] sm:$0xff] %v3610_v48  ;;  %v5314_v30 = vrot.slane %v3598_v31, 7  ;;  %v3647_v18 = vmul.f32 %v3588_v19, %v3590_v24  ;;  %v3652_v46 = vmul.f32 %v3433_v50, %v3598_v31  ;;  %v894_v55 = vrot.slane %v3610_v48, 7 }
 0x1c1   : > { %5414 = vst [vmem:[#allocation47_spill] sm:$0xff] %v3616_v1  ;;  %5415 = vst [vmem:[#allocation48_spill] sm:$0xff] %v3620_v3  ;;  %v3643_v62 = vsel %vm927_vm0, %v892_v29, %v893_v6  ;;  %v3662_v1 = vmul.f32 %v3475_v10, %v3598_v31  ;;  %v2800_v3 = vld [vmem:[#allocation8 + $0x10] sm:$0xff]   ;;  %v1321_v20 = vmul.f32 %v3588_v19, %v3598_v31  ;;  %2583 = vmatpush3.bf16.msra.mxu1 %v2799_v0 }
 0x1c2   : > { %5416 = vst [vmem:[#allocation49_spill] sm:$0xff] %v3624_v25  ;;  %5417 = vst [vmem:[#allocation50_spill] sm:$0xff] %v3643_v62  ;;  %v1046_v56 = vmul.f32 %v3503_v26, %v3643_v62  ;;  %v956_v29 = vsel %vm927_vm0, %v895_v45, %v5314_v30  ;;  %v981_v25 = vmul.f32 %v3446_v59, %v3643_v62  ;;  %2584 = vmatprep.subr.bf16.mxu1 %v2800_v3 }
 0x1c3   : > { %5418 = vst [vmem:[#allocation51_spill] sm:$0xff] %v3647_v18  ;;  %v1049_v57 = vmul.f32 %v3503_v26, %v956_v29  ;;  %v1114_v61 = vmul.f32 %v3637_v23, %v956_v29  ;;  %v957_v51 = vsel %vm927_vm0, %v894_v55, %v895_v45  ;;  %v958_v13 = vsel %vm927_vm0, %v893_v6, %v894_v55 }
 0x1c4   : > { %v3665_v58 = vpop.f32.mrb[16].mxu0  ;;  %v1078_v21 = vadd.f32 %v1046_v56, %v3539_v43  ;;  %v3684_v17 = vmul.f32 %v3446_v59, %v956_v29  ;;  %v3692_v18 = vmul.f32 %v3433_v50, %v3610_v48  ;;  %v1047_v45 = vmul.f32 %v3503_v26, %v958_v13 }
 0x1c5   : > { %v3672_v30 = vpop.f32.mrb[17].mxu0  ;;  %v3687_v8 = vadd.f32 %v1049_v57, %v3557_v52  ;;  %v1146_v16 = vadd.f32 %v1114_v61, %v3561_v54  ;;  %v1048_v55 = vmul.f32 %v3503_v26, %v957_v51  ;;  %v1113_v56 = vmul.f32 %v3637_v23, %v957_v51  ;;  %v2801_v52 = vld [vmem:[#allocation8 + $0x18] sm:$0xff]   ;;  %2585 = vmatpush3.bf16.msra.mxu1 %v2800_v3 }
 0x1c6   : > { %v3681_v63 = vpop.f32.mrb[18].mxu0  ;;  %v3701_v6 = vmul.f32 %v3475_v10, %v3610_v48  ;;  %v3705_v61 = vmul.f32 %v3446_v59, %v958_v13  ;;  %v3708_v29 = vmul.f32 %v3446_v59, %v957_v51  ;;  %v3710_v0 = vmin.f32 %v819_v37, 6.0  ;;  %2586 = vmatprep.subr.bf16.mxu1 %v2801_v52 }
 0x1c7   : > { %v3694_v43 = vpop.f32.mrb[19].mxu0  ;;  %v1215_v54 = vadd.f32 %v3467_v7, %v1146_v16  ;;  %v3713_v57 = vadd.f32 %v1047_v45, %v3581_v32  ;;  %v3716_v44 = vadd.f32 %v1048_v55, %v3584_v35  ;;  %v3719_v15 = vadd.f32 %v1113_v56, %v3576_v5 }
 0x1c8   : > { %5419 = vst [vmem:[#allocation52_spill] sm:$0xff] %v3710_v0  ;;  %v3721_v33 = vmin.f32 %v817_v53, 6.0  ;;  %v3725_v16 = vmul.f32 %v3637_v23, %v958_v13  ;;  %v3729_v51 = vmul.f32 %v3588_v19, %v3610_v48  ;;  %v899_v35 = vrot.slane %v3710_v0, 7  ;;  %v2802_v53 = vld [vmem:[#allocation8 + $0x20] sm:$0xff]  }
 0x1c9   : > { %5420 = vst [vmem:[#allocation53_spill] sm:$0xff] %v3719_v15  ;;  %v1284_v7 = vadd.f32 %v3532_v41, %v1215_v54  ;;  %v3735_v5 = vmul.f32 %v3433_v50, %v3710_v0  ;;  %v3739_v37 = vmul.f32 %v3475_v10, %v3710_v0  ;;  %v3748_v3 = vmul.f32 %v3588_v19, %v3710_v0 }
 0x1ca   : > { %5421 = vst [vmem:[#allocation54_spill] sm:$0xff] %v3721_v33  ;;  %5422 = vst [vmem:[#allocation55_spill] sm:$0xff] %v3725_v16  ;;  %v897_v13 = vrot.slane %v3721_v33, 7  ;;  %v3753_v56 = vmul.f32 %v3433_v50, %v3721_v33  ;;  %v5428_v32 = vrot.slane %v3598_v31, 7  ;;  %v818_v55 = vmax.f32 %v3601_v39, 0.0  ;;  %2587 = vmatpush3.bf16.msra.mxu1 %v2801_v52 }
 0x1cb   : > { %5423 = vst [vmem:[#allocation56_spill] sm:$0xff] %v3729_v51  ;;  %5424 = vst [vmem:[#allocation57_spill] sm:$0xff] %v3735_v5  ;;  %v3744_v45 = vadd.f32 %v1321_v20, %v1284_v7  ;;  %v3763_v20 = vmul.f32 %v3475_v10, %v3721_v33  ;;  %v5429_v7 = vmax.f32 %v3592_v11, 0.0  ;;  %v1322_v31 = vmul.f32 %v3588_v19, %v3721_v33 }
 0x1cc   : > { %5425 = vst [vmem:[#allocation58_spill] sm:$0xff] %v3739_v37  ;;  %v3742_v41 = vpop.f32.mrb[20].mxu0  ;;  %5427 = vst [vmem:[#allocation60_spill] sm:$0xff] %v3748_v3  ;;  %v955_v5 = vsel %vm927_vm0, %v5428_v32, %v897_v13  ;;  %v823_v32 = vmax.f32 %v3665_v58, 0.0  ;;  %v821_v51 = vmax.f32 %v3672_v30, 0.0  ;;  %2588 = vmatprep.subr.bf16.mxu1 %v2802_v53  ;;  %v3791_v24 = vmin.f32 %v818_v55, 6.0 }
 0x1cd   : > { %5426 = vst [vmem:[#allocation59_spill] sm:$0xff] %v3744_v45  ;;  %v3755_v54 = vpop.f32.mrb[21].mxu0  ;;  %v3767_v37 = vmin.f32 %v5429_v7, 6.0  ;;  %v1050_v0 = vmul.f32 %v3503_v26, %v955_v5  ;;  %v1115_v45 = vmul.f32 %v3637_v23, %v955_v5  ;;  %v3780_v11 = vmul.f32 %v3446_v59, %v955_v5 }
 0x1ce   : > { %v3770_v3 = vpop.f32.mrb[22].mxu0  ;;  %5431 = vst [vmem:[#allocation62_spill] sm:$0xff] %v3791_v24  ;;  %v3807_v55 = vmin.f32 %v823_v32, 6.0  ;;  %2589 = vmatpush3.bf16.msra.mxu1 %v2802_v53  ;;  %v3813_v33 = vmin.f32 %v821_v51, 6.0  ;;  %v824_v48 = vmax.f32 %v3681_v63, 0.0  ;;  %v3825_v32 = vmul.f32 %v3433_v50, %v3791_v24 }
 0x1cf   : > { %5430 = vst [vmem:[#allocation61_spill] sm:$0xff] %v3767_v37  ;;  %v3777_v15 = vpop.f32.mrb[23].mxu0  ;;  %v5325_v39 = vrot.slane %v3767_v37, 7  ;;  %v3785_v14 = vadd.f32 %v1050_v0, %v981_v25  ;;  %v1147_v9 = vadd.f32 %v1115_v45, %v1078_v21  ;;  %v3789_v58 = vmul.f32 %v3433_v50, %v3767_v37  ;;  %2590 = vmatprep.subr.bf16.mxu1 %v2803_v12 }
 0x1d0   : > { %v3799_v5 = vmul.f32 %v3475_v10, %v3767_v37  ;;  %v1325_v30 = vmul.f32 %v3588_v19, %v3767_v37  ;;  %5432 = vst [vmem:[#allocation63_spill] sm:$0xff] %v3807_v55  ;;  %5433 = vst [vmem:[#allocation64_spill] sm:$0xff] %v3813_v33 }
 0x1d1   : > { %v952_v52 = vsel %vm927_vm0, %v899_v35, %v5325_v39  ;;  %v1216_v25 = vadd.f32 %v3507_v27, %v1147_v9  ;;  %v898_v39 = vrot.slane %v3791_v24, 7  ;;  %v2804_v9 = vld [vmem:[#allocation8 + $0x30] sm:$0xff]  }
 0x1d2   : > { %v1053_v0 = vmul.f32 %v3503_v26, %v952_v52  ;;  %v1118_v45 = vmul.f32 %v3637_v23, %v952_v52  ;;  %v3810_v7 = vmul.f32 %v3446_v59, %v952_v52  ;;  %2591 = vmatpush3.bf16.msra.mxu1 %v2803_v12  ;;  %v3861_v12 = vmul.f32 %v3433_v50, %v3807_v55 }
 0x1d3   : > { %v1285_v27 = vadd.f32 %v3634_v28, %v1216_v25  ;;  %v953_v63 = vsel %vm927_vm0, %v898_v39, %v899_v35  ;;  %v954_v51 = vsel %vm927_vm0, %v897_v13, %v898_v39  ;;  %v3835_v28 = vmul.f32 %v3475_v10, %v3791_v24  ;;  %2592 = vmatprep.subr.bf16.mxu1 %v2804_v9 }
 0x1d4   : > { %v3816_v36 = vpop.f32.mrb[24].mxu0  ;;  %v3820_v21 = vadd.f32 %v1053_v0, %v3684_v17  ;;  %v1150_v53 = vadd.f32 %v1118_v45, %v3687_v8  ;;  %v1323_v17 = vmul.f32 %v3588_v19, %v3791_v24  ;;  %v1051_v13 = vmul.f32 %v3503_v26, %v954_v51  ;;  %5435 = vst [vmem:[#allocation66_spill] sm:$0xff] %v3861_v12 }
 0x1d5   : > { %v3827_v52 = vpop.f32.mrb[25].mxu0  ;;  %v3841_v25 = vadd.f32 %v1322_v31, %v1285_v27  ;;  %v1052_v39 = vmul.f32 %v3503_v26, %v953_v63  ;;  %v1116_v16 = vmul.f32 %v3637_v23, %v954_v51  ;;  %v1117_v4 = vmul.f32 %v3637_v23, %v953_v63  ;;  %v2805_v31 = vld [vmem:[#allocation8 + $0x38] sm:$0xff]  }
 0x1d6   : > { %v3839_v8 = vpop.f32.mrb[26].mxu0  ;;  %v1219_v0 = vadd.f32 %v3528_v40, %v1150_v53  ;;  %v3854_v40 = vmul.f32 %v3446_v59, %v954_v51  ;;  %v3857_v53 = vmul.f32 %v3446_v59, %v953_v63  ;;  %v3864_v45 = vadd.f32 %v1051_v13, %v3705_v61  ;;  %2593 = vmatpush3.bf16.msra.mxu1 %v2804_v9 }
 0x1d7   : > { %5434 = vst [vmem:[#allocation65_spill] sm:$0xff] %v3841_v25  ;;  %v3846_v2 = vpop.f32.mrb[27].mxu0  ;;  %v3867_v35 = vadd.f32 %v1052_v39, %v3708_v29  ;;  %v1148_v25 = vadd.f32 %v1116_v16, %v3713_v57  ;;  %v3877_v63 = vmul.f32 %v3475_v10, %v3807_v55  ;;  %v901_v61 = vrot.slane %v3813_v33, 7  ;;  %2594 = vmatprep.subr.bf16.mxu1 %v2805_v31 }
 0x1d8   : > { %v1288_v27 = vadd.f32 %v3662_v1, %v1219_v0  ;;  %v3871_v1 = vadd.f32 %v1117_v4, %v3716_v44  ;;  %v3881_v0 = vmul.f32 %v3588_v19, %v3807_v55  ;;  %v3888_v4 = vmul.f32 %v3433_v50, %v3813_v33 }
 0x1d9   : > { %5438 = vst [vmem:[#allocation69_spill] sm:$0xff] %v3877_v63  ;;  %v1217_v29 = vadd.f32 %v3536_v42, %v1148_v25  ;;  %v3890_v44 = vmin.f32 %v824_v48, 6.0  ;;  %v3900_v9 = vmul.f32 %v3475_v10, %v3813_v33  ;;  %v1326_v42 = vmul.f32 %v3588_v19, %v3813_v33 }
 0x1da   : > { %5436 = vst [vmem:[#allocation67_spill] sm:$0xff] %v3871_v1  ;;  %v3873_v51 = vadd.f32 %v1325_v30, %v1288_v27  ;;  %5439 = vst [vmem:[#allocation70_spill] sm:$0xff] %v3881_v0  ;;  %v5441_v30 = vrot.slane %v3767_v37, 7  ;;  %v822_v25 = vmax.f32 %v3694_v43, 0.0  ;;  %v827_v12 = vmax.f32 %v3742_v41, 0.0  ;;  %2595 = vmatpush3.bf16.msra.mxu1 %v2805_v31 }
 0x1db   : > { %5440 = vst [vmem:[#allocation71_spill] sm:$0xff] %v3890_v44  ;;  %v1286_v48 = vadd.f32 %v3701_v6, %v1217_v29  ;;  %v825_v43 = vmax.f32 %v3755_v54, 0.0  ;;  %v5443_v0 = vrot.slane %v3807_v55, 7  ;;  %v3937_v54 = vmul.f32 %v3475_v10, %v3890_v44 }
 0x1dc   : > { %5437 = vst [vmem:[#allocation68_spill] sm:$0xff] %v3873_v51  ;;  %v3892_v16 = vpop.f32.mrb[28].mxu0  ;;  %v951_v13 = vsel %vm927_vm0, %v5441_v30, %v901_v61  ;;  %v904_v51 = vrot.slane %v3890_v44, 7 }
 0x1dd   : > { %v3905_v39 = vpop.f32.mrb[29].mxu0  ;;  %v1054_v27 = vmul.f32 %v3503_v26, %v951_v13  ;;  %v1119_v57 = vmul.f32 %v3637_v23, %v951_v13  ;;  %v3914_v63 = vmul.f32 %v3446_v59, %v951_v13  ;;  %v3921_v6 = vadd.f32 %v1323_v17, %v1286_v48 }
 0x1de   : > { %v3911_v30 = vpop.f32.mrb[30].mxu0  ;;  %v3929_v13 = vmul.f32 %v3433_v50, %v3890_v44  ;;  %v948_v33 = vsel %vm927_vm0, %v5443_v0, %v904_v51  ;;  %v1329_v17 = vmul.f32 %v3588_v19, %v3890_v44  ;;  %v3946_v48 = vmin.f32 %v827_v12, 6.0 }
 0x1df   : > { %v3919_v37 = vpop.f32.mrb[31].mxu0  ;;  %5442 = vst [vmem:[#allocation72_spill] sm:$0xff] %v3921_v6  ;;  %v3924_v29 = vadd.f32 %v1054_v27, %v3780_v11  ;;  %v1151_v41 = vadd.f32 %v1119_v57, %v3785_v14  ;;  %v3941_v11 = vmin.f32 %v822_v25, 6.0  ;;  %v1057_v31 = vmul.f32 %v3503_v26, %v948_v33 }
 0x1e0   : > { %v1122_v57 = vmul.f32 %v3637_v23, %v948_v33  ;;  %5445 = vst [vmem:[#allocation74_spill] sm:$0xff] %v3946_v48  ;;  %v3949_v27 = vmul.f32 %v3446_v59, %v948_v33  ;;  %v3953_v6 = vmin.f32 %v825_v43, 6.0  ;;  %v5447_v33 = vmov %v5443_v0 }
 0x1e1   : > { %5444 = vst [vmem:[#allocation73_spill] sm:$0xff] %v3941_v11  ;;  %v1220_v14 = vadd.f32 %v3630_v22, %v1151_v41  ;;  %v902_v1 = vrot.slane %v3941_v11, 7  ;;  %v3957_v24 = vadd.f32 %v1057_v31, %v3810_v7  ;;  %v3962_v12 = vmul.f32 %v3433_v50, %v3941_v11 }
 0x1e2   : > { %5446 = vst [vmem:[#allocation75_spill] sm:$0xff] %v3953_v6  ;;  %v1154_v22 = vadd.f32 %v1122_v57, %v3820_v21  ;;  %v1327_v7 = vmul.f32 %v3588_v19, %v3941_v11 }
 0x1e3   : > { %v1289_v25 = vadd.f32 %v3763_v20, %v1220_v14  ;;  %v949_v0 = vsel %vm927_vm0, %v902_v1, %v5447_v33  ;;  %v950_v43 = vsel %vm927_vm0, %v901_v61, %v902_v1  ;;  %v3974_v20 = vmul.f32 %v3475_v10, %v3941_v11 }
 0x1e4   : > { %v3964_v41 = vpop.f32.mrb[32].mxu0  ;;  %v1223_v31 = vadd.f32 %v3652_v46, %v1154_v22  ;;  %v907_v33 = vrot.slane %v3946_v48, 7  ;;  %v1055_v1 = vmul.f32 %v3503_v26, %v950_v43  ;;  %v1056_v61 = vmul.f32 %v3503_v26, %v949_v0 }
 0x1e5   : > { %v3978_v21 = vpop.f32.mrb[33].mxu0  ;;  %v3980_v14 = vadd.f32 %v1326_v42, %v1289_v25  ;;  %v1120_v55 = vmul.f32 %v3637_v23, %v950_v43  ;;  %v1121_v49 = vmul.f32 %v3637_v23, %v949_v0  ;;  %v3995_v46 = vmul.f32 %v3446_v59, %v950_v43 }
 0x1e6   : > { %v3985_v44 = vpop.f32.mrb[34].mxu0  ;;  %v1292_v42 = vadd.f32 %v3799_v5, %v1223_v31  ;;  %v3998_v25 = vmul.f32 %v3446_v59, %v949_v0  ;;  %v4002_v22 = vmul.f32 %v3433_v50, %v3946_v48  ;;  %v4005_v57 = vadd.f32 %v1055_v1, %v3854_v40 }
 0x1e7   : > { %5448 = vst [vmem:[#allocation76_spill] sm:$0xff] %v3980_v14  ;;  %v3991_v38 = vpop.f32.mrb[35].mxu0  ;;  %v4008_v14 = vadd.f32 %v1056_v61, %v3857_v53  ;;  %v1152_v11 = vadd.f32 %v1120_v55, %v3864_v45  ;;  %v4012_v5 = vadd.f32 %v1121_v49, %v3867_v35  ;;  %v4018_v0 = vmul.f32 %v3475_v10, %v3946_v48 }
 0x1e8   : > { %5449 = vst [vmem:[#allocation77_spill] sm:$0xff] %v4002_v22  ;;  %v4014_v43 = vadd.f32 %v1329_v17, %v1292_v42  ;;  %v4022_v31 = vmul.f32 %v3588_v19, %v3946_v48  ;;  %v905_v40 = vrot.slane %v3953_v6, 7  ;;  %v4029_v49 = vmul.f32 %v3433_v50, %v3953_v6 }
 0x1e9   : > { %5450 = vst [vmem:[#allocation78_spill] sm:$0xff] %v4012_v5  ;;  %5452 = vst [vmem:[#allocation80_spill] sm:$0xff] %v4018_v0  ;;  %v1221_v53 = vadd.f32 %v3692_v18, %v1152_v11  ;;  %v828_v55 = vmax.f32 %v3770_v3, 0.0  ;;  %v826_v35 = vmax.f32 %v3777_v15, 0.0  ;;  %v831_v17 = vmax.f32 %v3816_v36, 0.0 }
 0x1ea   : > { %5451 = vst [vmem:[#allocation79_spill] sm:$0xff] %v4014_v43  ;;  %5453 = vst [vmem:[#allocation81_spill] sm:$0xff] %v4022_v31  ;;  %v947_v45 = vsel %vm927_vm0, %v904_v51, %v905_v40  ;;  %v829_v61 = vmax.f32 %v3827_v52, 0.0  ;;  %v4044_v3 = vmul.f32 %v3475_v10, %v3953_v6  ;;  %v1330_v15 = vmul.f32 %v3588_v19, %v3953_v6 }
 0x1eb   : > { %v1290_v18 = vadd.f32 %v3835_v28, %v1221_v53  ;;  %v1058_v11 = vmul.f32 %v3503_v26, %v947_v45  ;;  %v1123_v1 = vmul.f32 %v3637_v23, %v947_v45  ;;  %v4051_v52 = vmin.f32 %v828_v55, 6.0 }
 0x1ec   : > { %v4037_v42 = vpop.f32.mrb[36].mxu0  ;;  %v4053_v51 = vmin.f32 %v826_v35, 6.0  ;;  %v993_v0 = vmul.f32 %v3446_v59, %v947_v45  ;;  %v4065_v62 = vmin.f32 %v831_v17, 6.0  ;;  %v4067_v55 = vmin.f32 %v829_v61, 6.0 }
 0x1ed   : > { %v4046_v22 = vpop.f32.mrb[37].mxu0  ;;  %5454 = vst [vmem:[#allocation82_spill] sm:$0xff] %v4051_v52  ;;  %v4057_v53 = vadd.f32 %v1327_v7, %v1290_v18  ;;  %v1090_v31 = vadd.f32 %v1058_v11, %v3914_v63  ;;  %v1155_v48 = vadd.f32 %v1123_v1, %v3924_v29  ;;  %v908_v5 = vrot.slane %v4051_v52, 7 }
 0x1ee   : > { %v4055_v28 = vpop.f32.mrb[38].mxu0  ;;  %v832_v35 = vmax.f32 %v3839_v8, 0.0  ;;  %v4073_v7 = vmul.f32 %v3433_v50, %v4051_v52  ;;  %v4077_v63 = vmul.f32 %v3475_v10, %v4051_v52  ;;  %v906_v29 = vrot.slane %v4053_v51, 7 }
 0x1ef   : > { %5455 = vst [vmem:[#allocation83_spill] sm:$0xff] %v4055_v28  ;;  %5456 = vst [vmem:[#allocation84_spill] sm:$0xff] %v4057_v53  ;;  %v4062_v43 = vpop.f32.mrb[39].mxu0  ;;  %v1224_v36 = vadd.f32 %v3753_v56, %v1155_v48  ;;  %v944_v1 = vsel %vm927_vm0, %v907_v33, %v908_v5  ;;  %v1333_v45 = vmul.f32 %v3588_v19, %v4051_v52 }
 0x1f0   : > { %5457 = vst [vmem:[#allocation85_spill] sm:$0xff] %v4062_v43  ;;  %v4087_v56 = vmul.f32 %v3433_v50, %v4053_v51  ;;  %v1061_v17 = vmul.f32 %v3503_v26, %v944_v1  ;;  %v1126_v61 = vmul.f32 %v3637_v23, %v944_v1  ;;  %v4094_v18 = vmul.f32 %v3475_v10, %v4053_v51 }
 0x1f1   : > { %v1293_v48 = vadd.f32 %v3900_v9, %v1224_v36  ;;  %v945_v11 = vsel %vm927_vm0, %v906_v29, %v907_v33  ;;  %v946_v8 = vsel %vm927_vm0, %v905_v40, %v906_v29  ;;  %v1331_v52 = vmul.f32 %v3588_v19, %v4053_v51 }
 0x1f2   : > { %v996_v36 = vmul.f32 %v3446_v59, %v944_v1  ;;  %v1093_v53 = vadd.f32 %v1061_v17, %v3949_v27  ;;  %v1158_v43 = vadd.f32 %v1126_v61, %v3957_v24  ;;  %v1059_v28 = vmul.f32 %v3503_v26, %v946_v8 }
 0x1f3   : > { %v4103_v9 = vadd.f32 %v1330_v15, %v1293_v48  ;;  %v1060_v33 = vmul.f32 %v3503_v26, %v945_v11  ;;  %v1124_v47 = vmul.f32 %v3637_v23, %v946_v8  ;;  %v911_v40 = vrot.slane %v4065_v62, 7 }
 0x1f4   : > { %v1227_v29 = vadd.f32 %v3789_v58, %v1158_v43  ;;  %v4114_v6 = vmul.f32 %v3446_v59, %v946_v8  ;;  %v1125_v15 = vmul.f32 %v3637_v23, %v945_v11  ;;  %v4119_v27 = vmul.f32 %v3433_v50, %v4065_v62 }
 0x1f5   : > { %5458 = vst [vmem:[#allocation86_spill] sm:$0xff] %v4103_v9  ;;  %v995_v24 = vmul.f32 %v3446_v59, %v945_v11  ;;  %v1091_v1 = vadd.f32 %v1059_v28, %v3995_v46  ;;  %v1092_v48 = vadd.f32 %v1060_v33, %v3998_v25  ;;  %v1156_v17 = vadd.f32 %v1124_v47, %v4005_v57 }
 0x1f6   : > { %v1296_v61 = vadd.f32 %v3937_v54, %v1227_v29  ;;  %v4127_v58 = vadd.f32 %v1125_v15, %v4008_v14  ;;  %v4131_v43 = vmul.f32 %v3475_v10, %v4065_v62  ;;  %v909_v8 = vrot.slane %v4067_v55, 7 }
 0x1f7   : > { %v1225_v9 = vadd.f32 %v3825_v32, %v1156_v17  ;;  %v4137_v46 = vmul.f32 %v3588_v19, %v4065_v62  ;;  %v4142_v47 = vmul.f32 %v3433_v50, %v4067_v55  ;;  %v4148_v57 = vmin.f32 %v832_v35, 6.0 }
 0x1f8   : > { %5459 = vst [vmem:[#allocation87_spill] sm:$0xff] %v4127_v58  ;;  %5460 = vst [vmem:[#allocation88_spill] sm:$0xff] %v4131_v43  ;;  %v4144_v54 = vadd.f32 %v1333_v45, %v1296_v61  ;;  %v943_v14 = vsel %vm927_vm0, %v908_v5, %v909_v8  ;;  %v830_v28 = vmax.f32 %v3846_v2, 0.0  ;;  %v4156_v29 = vmul.f32 %v3475_v10, %v4067_v55 }
 0x1f9   : > { %5461 = vst [vmem:[#allocation89_spill] sm:$0xff] %v4137_v46  ;;  %5463 = vst [vmem:[#allocation91_spill] sm:$0xff] %v4148_v57  ;;  %v1294_v32 = vadd.f32 %v3974_v20, %v1225_v9  ;;  %v1062_v11 = vmul.f32 %v3503_v26, %v943_v14  ;;  %v1127_v33 = vmul.f32 %v3637_v23, %v943_v14  ;;  %v912_v2 = vrot.slane %v4148_v57, 7 }
 0x1fa   : > { %5462 = vst [vmem:[#allocation90_spill] sm:$0xff] %v4144_v54  ;;  %v4159_v45 = vmul.f32 %v3446_v59, %v943_v14  ;;  %v1334_v5 = vmul.f32 %v3588_v19, %v4067_v55  ;;  %v4169_v17 = vmul.f32 %v3433_v50, %v4148_v57  ;;  %v4175_v14 = vmul.f32 %v3475_v10, %v4148_v57 }
 0x1fb   : > { %v4165_v15 = vadd.f32 %v1331_v52, %v1294_v32  ;;  %v1094_v20 = vadd.f32 %v1062_v11, %v993_v0  ;;  %v1159_v9 = vadd.f32 %v1127_v33, %v1090_v31  ;;  %v940_v61 = vsel %vm927_vm0, %v911_v40, %v912_v2 }
 0x1fc   : > { %v4177_v25 = vmin.f32 %v830_v28, 6.0  ;;  %v835_v35 = vmax.f32 %v3892_v16, 0.0  ;;  %v1065_v0 = vmul.f32 %v3503_v26, %v940_v61  ;;  %v1130_v31 = vmul.f32 %v3637_v23, %v940_v61 }
 0x1fd   : > { %5464 = vst [vmem:[#allocation92_spill] sm:$0xff] %v4165_v15  ;;  %v1228_v52 = vadd.f32 %v3888_v4, %v1159_v9  ;;  %v833_v32 = vmax.f32 %v3905_v39, 0.0  ;;  %v4185_v11 = vmul.f32 %v3446_v59, %v940_v61  ;;  %v1337_v33 = vmul.f32 %v3588_v19, %v4148_v57 }
 0x1fe   : > { %v910_v28 = vrot.slane %v4177_v25, 7  ;;  %v4192_v46 = vadd.f32 %v1065_v0, %v996_v36  ;;  %v1162_v4 = vadd.f32 %v1130_v31, %v1093_v53  ;;  %v4196_v9 = vmul.f32 %v3433_v50, %v4177_v25 }
 0x1ff   : > { %v1297_v16 = vadd.f32 %v4044_v3, %v1228_v52  ;;  %v4204_v43 = vmul.f32 %v3475_v10, %v4177_v25  ;;  %v1335_v3 = vmul.f32 %v3588_v19, %v4177_v25  ;;  %v4211_v52 = vmin.f32 %v835_v35, 6.0 }
 0x200   : > { %v941_v39 = vsel %vm927_vm0, %v910_v28, %v911_v40  ;;  %v942_v61 = vsel %vm927_vm0, %v909_v8, %v910_v28  ;;  %v1231_v53 = vadd.f32 %v3929_v13, %v1162_v4  ;;  %v4213_v0 = vmin.f32 %v833_v32, 6.0 }
 0x201   : > { %v4208_v36 = vadd.f32 %v1334_v5, %v1297_v16  ;;  %v1063_v40 = vmul.f32 %v3503_v26, %v942_v61  ;;  %v1064_v31 = vmul.f32 %v3503_v26, %v941_v39  ;;  %v1128_v8 = vmul.f32 %v3637_v23, %v942_v61 }
 0x202   : > { %v1129_v28 = vmul.f32 %v3637_v23, %v941_v39  ;;  %v1300_v54 = vadd.f32 %v4077_v63, %v1231_v53  ;;  %v4221_v58 = vmul.f32 %v3446_v59, %v942_v61  ;;  %v4224_v5 = vmul.f32 %v3446_v59, %v941_v39 }
 0x203   : > { %5465 = vst [vmem:[#allocation93_spill] sm:$0xff] %v4208_v36  ;;  %v5355_v13 = vrot.slane %v4177_v25, 1  ;;  %v1095_v35 = vadd.f32 %v1063_v40, %v4114_v6  ;;  %v1096_v32 = vadd.f32 %v1064_v31, %v995_v24  ;;  %v1160_v16 = vadd.f32 %v1128_v8, %v1091_v1 }
 0x204   : > { %v4228_v4 = vadd.f32 %v1129_v28, %v1092_v48  ;;  %v4230_v36 = vadd.f32 %v1337_v33, %v1300_v54  ;;  %v915_v15 = vrot.slane %v4211_v52, 7  ;;  %v4235_v63 = vmul.f32 %v3433_v50, %v4211_v52 }
 0x205   : > { %v913_v61 = vrot.slane %v4213_v0, 7  ;;  %v1229_v59 = vadd.f32 %v3962_v12, %v1160_v16  ;;  %v4241_v39 = vmul.f32 %v3475_v10, %v4211_v52  ;;  %v4245_v6 = vmul.f32 %v3588_v19, %v4211_v52 }
 0x206   : > { %5466 = vst [vmem:[#allocation94_spill] sm:$0xff] %v4228_v4  ;;  %5467 = vst [vmem:[#allocation95_spill] sm:$0xff] %v4230_v36  ;;  %v836_v50 = vmax.f32 %v3911_v30, 0.0  ;;  %v834_v48 = vmax.f32 %v3919_v37, 0.0  ;;  %v839_v12 = vmax.f32 %v3964_v41, 0.0  ;;  %v837_v40 = vmax.f32 %v3978_v21, 0.0 }
 0x207   : > { %5468 = vst [vmem:[#allocation96_spill] sm:$0xff] %v4241_v39  ;;  %5469 = vst [vmem:[#allocation97_spill] sm:$0xff] %v4245_v6  ;;  %v4250_v1 = vsel %vm927_vm0, %v912_v2, %v913_v61  ;;  %v1298_v54 = vadd.f32 %v4094_v18, %v1229_v59  ;;  %v4263_v2 = vmul.f32 %v3475_v10, %v4213_v0  ;;  %v5470_v37 = vrot.slane %v4067_v55, 1 }
 0x208   : > { %v1066_v33 = vmul.f32 %v3503_v26, %v4250_v1  ;;  %v1131_v53 = vmul.f32 %v3637_v23, %v4250_v1  ;;  %v4265_v31 = vmin.f32 %v836_v50, 6.0  ;;  %v4267_v30 = vmin.f32 %v834_v48, 6.0 }
 0x209   : > { %v4275_v41 = vsel %vm1422_vm1, %v5470_v37, %v5355_v13  ;;  %v4277_v18 = vadd.f32 %v1335_v3, %v1298_v54  ;;  %v1338_v21 = vmul.f32 %v3588_v19, %v4213_v0  ;;  %v4284_v50 = vmin.f32 %v839_v12, 6.0 }
 0x20a   : > { %v1163_v8 = vadd.f32 %v1131_v53, %v1094_v20  ;;  %v1098_v28 = vadd.f32 %v1066_v33, %v4159_v45  ;;  %v916_v59 = vrot.slane %v4265_v31, 7  ;;  %v4286_v48 = vmin.f32 %v837_v40, 6.0 }
 0x20b   : > { %v4291_v3 = vmul.f32 %v3475_v10, %v4265_v31  ;;  %v1341_v20 = vmul.f32 %v3588_v19, %v4265_v31  ;;  %v914_v54 = vrot.slane %v4267_v30, 7  ;;  %v4303_v33 = vmul.f32 %v3475_v10, %v4267_v30 }
 0x20c   : > { %v1232_v24 = vadd.f32 %v4029_v49, %v1163_v8  ;;  %v4298_v45 = vsel %vm927_vm0, %v915_v15, %v916_v59  ;;  %v1339_v49 = vmul.f32 %v3588_v19, %v4267_v30  ;;  %v4331_v8 = vmul.f32 %v3475_v10, %v4284_v50 }
 0x20d   : > { %v1134_v40 = vmul.f32 %v3637_v23, %v4298_v45  ;;  %v4312_v37 = vsel %vm927_vm0, %v914_v54, %v915_v15  ;;  %v1069_v13 = vmul.f32 %v3503_v26, %v4298_v45  ;;  %v4319_v16 = vsel %vm927_vm0, %v913_v61, %v914_v54 }
 0x20e   : > { %v1301_v53 = vadd.f32 %v4156_v29, %v1232_v24  ;;  %v1133_v12 = vmul.f32 %v3637_v23, %v4312_v37  ;;  %v919_v29 = vrot.slane %v4284_v50, 7  ;;  %v1132_v15 = vmul.f32 %v3637_v23, %v4319_v16 }
 0x20f   : > { %v1166_v39 = vadd.f32 %v1134_v40, %v4192_v46  ;;  %v1068_v61 = vmul.f32 %v3503_v26, %v4312_v37  ;;  %v4339_v6 = vmul.f32 %v3588_v19, %v4284_v50  ;;  %v1416_v36 = vrot.slane %v4284_v50, 1 }
 0x210   : > { %v4324_v24 = vadd.f32 %v1338_v21, %v1301_v53  ;;  %v4335_v54 = vadd.f32 %v1133_v12, %v1096_v32  ;;  %v917_v21 = vrot.slane %v4286_v48, 7  ;;  %v1067_v53 = vmul.f32 %v3503_v26, %v4319_v16 }
 0x211   : > { %5473 = vst [vmem:[#allocation100_spill] sm:$0xff] %v4339_v6  ;;  %v1235_v46 = vadd.f32 %v4073_v7, %v1166_v39  ;;  %v1164_v40 = vadd.f32 %v1132_v15, %v1095_v35  ;;  %v840_v12 = vmax.f32 %v3985_v44, 0.0  ;;  %v4356_v35 = vmul.f32 %v3475_v10, %v4286_v48 }
 0x212   : > { %5471 = vst [vmem:[#allocation98_spill] sm:$0xff] %v4324_v24  ;;  %5472 = vst [vmem:[#allocation99_spill] sm:$0xff] %v4335_v54  ;;  %v1414_v24 = vrot.slane %v4286_v48, 1  ;;  %v935_v32 = vsel %vm927_vm0, %v916_v59, %v917_v21  ;;  %v1101_v54 = vadd.f32 %v1069_v13, %v4185_v11  ;;  %v5474_v39 = vrot.slane %v4265_v31, 1 }
 0x213   : > { %v1304_v6 = vadd.f32 %v4175_v14, %v1235_v46  ;;  %v1233_v4 = vadd.f32 %v4087_v56, %v1164_v40  ;;  %v1135_v7 = vmul.f32 %v3637_v23, %v935_v32  ;;  %v4364_v59 = vmin.f32 %v840_v12, 6.0 }
 0x214   : > { %v4362_v50 = vsel %vm1422_vm1, %v5474_v39, %v1414_v24  ;;  %v5475_v44 = vrot.slane %v4213_v0, 1  ;;  %v5476_v14 = vrot.slane %v4148_v57, 1  ;;  %v838_v11 = vmax.f32 %v3991_v38, 0.0 }
 0x215   : > { %v4375_v13 = vadd.f32 %v1341_v20, %v1304_v6  ;;  %v1302_v15 = vadd.f32 %v4204_v43, %v1233_v4  ;;  %v1167_v46 = vadd.f32 %v1135_v7, %v1098_v28  ;;  %v1342_v40 = vmul.f32 %v3588_v19, %v4286_v48 }
 0x216   : > { %v4372_v56 = vsel %vm1422_vm1, %v5476_v14, %v5475_v44  ;;  %v1070_v12 = vmul.f32 %v3503_v26, %v935_v32  ;;  %v1492_v39 = vmul.f32 %v3448_v60, %v4275_v41  ;;  %v920_v57 = vrot.slane %v4364_v59, 7 }
 0x217   : > { %5477 = vst [vmem:[#allocation101_spill] sm:$0xff] %v4375_v13  ;;  %v1417_v44 = vrot.slane %v4364_v59, 1  ;;  %v4385_v14 = vadd.f32 %v1339_v49, %v1302_v15  ;;  %v1236_v38 = vadd.f32 %v4142_v47, %v1167_v46  ;;  %v878_v6 = vmin.f32 %v838_v11, 6.0 }
 0x218   : > { %v1099_v43 = vadd.f32 %v1067_v53, %v4221_v58  ;;  %v932_v4 = vsel %vm927_vm0, %v919_v29, %v920_v57  ;;  %v1100_v48 = vadd.f32 %v1068_v61, %v4224_v5  ;;  %v5479_v20 = vrot.slane %v4065_v62, 1 }
 0x219   : > { %v4393_v28 = vsel %vm1422_vm1, %v1416_v36, %v1417_v44  ;;  %v5480_v32 = vrot.slane %v4177_v25, 1  ;;  %v1305_v47 = vadd.f32 %v4263_v2, %v1236_v38  ;;  %v1138_v58 = vmul.f32 %v3637_v23, %v932_v4 }
 0x21a   : > { %5478 = vst [vmem:[#allocation102_spill] sm:$0xff] %v4393_v28  ;;  %v4408_v53 = vmul.f32 %v3475_v10, %v4364_v59  ;;  %v1495_v7 = vmul.f32 %v3448_v60, %v4372_v56  ;;  %v1073_v5 = vmul.f32 %v3503_v26, %v932_v4  ;;  %v1345_v25 = vmul.f32 %v3588_v19, %v4364_v59 }
 0x21b   : > { %v4402_v49 = vsel %vm1422_vm1, %v5480_v32, %v5479_v20  ;;  %v918_v61 = vrot.slane %v878_v6, 7  ;;  %v1415_v11 = vrot.slane %v878_v6, 1  ;;  %v1374_v15 = vadd.f32 %v1342_v40, %v1305_v47  ;;  %v4435_v40 = vld [vmem:[#allocation7 + $0x2] ss:$0 sm:$0xff] }
 0x21c   : > { %v1170_v46 = vadd.f32 %v1138_v58, %v1101_v54  ;;  %v4416_v2 = vmul.f32 %v3475_v10, %v878_v6  ;;  %v843_v38 = vmax.f32 %v4037_v42, 0.0  ;;  %v1343_v42 = vmul.f32 %v3588_v19, %v878_v6 }
 0x21d   : > { %v933_v20 = vsel %vm927_vm0, %v918_v61, %v919_v29  ;;  %v934_v60 = vsel %vm927_vm0, %v917_v21, %v918_v61  ;;  %v4425_v4 = vsel %vm1422_vm1, %v1415_v11, %v1416_v36  ;;  %v4429_v59 = vsel %vm1422_vm1, %v1414_v24, %v1415_v11 }
 0x21e   : > { %v4431_v54 = vadd.f32 %v1492_v39, %v1374_v15  ;;  %v1239_v10 = vadd.f32 %v4169_v17, %v1170_v46  ;;  %v1493_v29 = vmul.f32 %v4435_v40, %v4402_v49  ;;  %v1136_v21 = vmul.f32 %v3637_v23, %v934_v60  ;;  %v2823_v17 = vld [vmem:[#allocation7] ss:$0 sm:$0xff] }
 0x21f   : > { %v1137_v36 = vmul.f32 %v3637_v23, %v933_v20  ;;  %v4441_v32 = vmin.f32 %v843_v38, 6.0  ;;  %v841_v24 = vmax.f32 %v4046_v22, 0.0  ;;  %v1071_v47 = vmul.f32 %v3503_v26, %v934_v60  ;;  %v2824_v22 = vld [vmem:[#allocation7 + $0x1] ss:$0 sm:$0xff] }
 0x220   : > { %5481 = vst [vmem:[#allocation103_spill] sm:$0xff] %v4431_v54  ;;  %v1308_v39 = vadd.f32 %v4291_v3, %v1239_v10  ;;  %v1001_v6 = vmul.f32 %v2823_v17, %v4250_v1  ;;  %v5482_v58 = vrot.slane %v4267_v30, 1  ;;  %v5483_v61 = vrot.slane %v4213_v0, 1 }
 0x221   : > { %v1072_v15 = vmul.f32 %v3503_v26, %v933_v20  ;;  %v1168_v46 = vadd.f32 %v1136_v21, %v1099_v43  ;;  %v1169_v38 = vadd.f32 %v1137_v36, %v1100_v48  ;;  %v1208_v3 = vmul.f32 %v2824_v22, %v4213_v0  ;;  %v5488_v21 = vld [vmem:[#allocation83_spill] sm:$0xff] }
 0x222   : > { %v4453_v11 = vsel %vm1422_vm1, %v5483_v61, %v5482_v58  ;;  %v1377_v10 = vadd.f32 %v1345_v25, %v1308_v39  ;;  %v923_v60 = vrot.slane %v4441_v32, 7  ;;  %v881_v28 = vmin.f32 %v841_v24, 6.0  ;;  %v5489_v39 = vld [vmem:[#allocation50_spill] sm:$0xff] }
 0x223   : > { %v1102_v1 = vadd.f32 %v1070_v12, %v1001_v6  ;;  %v1237_v54 = vadd.f32 %v4196_v9, %v1168_v46  ;;  %v4460_v13 = vadd.f32 %v4119_v27, %v1169_v38  ;;  %v4464_v58 = vmul.f32 %v3588_v19, %v4441_v32  ;;  %v5487_v27 = vld [vmem:[#allocation35_spill] sm:$0xff] }
 0x224   : > { %v1420_v26 = vrot.slane %v4441_v32, 1  ;;  %v4467_v43 = vadd.f32 %v1495_v7, %v1377_v10  ;;  %v921_v48 = vrot.slane %v881_v28, 7  ;;  %v1418_v0 = vrot.slane %v881_v28, 1 }
 0x225   : > { %5484 = vst [vmem:[#allocation104_spill] sm:$0xff] %v4460_v13  ;;  %5485 = vst [vmem:[#allocation105_spill] sm:$0xff] %v4464_v58  ;;  %v1496_v25 = vmul.f32 %v4435_v40, %v4453_v11  ;;  %v1306_v12 = vadd.f32 %v4303_v33, %v1237_v54  ;;  %v1346_v9 = vmul.f32 %v3588_v19, %v881_v28  ;;  %v844_v36 = vmax.f32 %v5488_v21, 0.0 }
 0x226   : > { %5486 = vst [vmem:[#allocation106_spill] sm:$0xff] %v4467_v43  ;;  %v1565_v20 = vmul.f32 %v5487_v27, %v4429_v59  ;;  %v931_v24 = vsel %vm927_vm0, %v920_v57, %v921_v48  ;;  %v1426_v7 = vsel %vm1422_vm1, %v1417_v44, %v1418_v0  ;;  %v1004_v32 = vmul.f32 %v2823_v17, %v4298_v45  ;;  %v5490_v44 = vld [vmem:[#allocation85_spill] sm:$0xff] }
 0x227   : > { %v1111_v6 = vmul.f32 %v3637_v23, %v5489_v39  ;;  %v1375_v61 = vadd.f32 %v1343_v42, %v1306_v12  ;;  %v1139_v33 = vmul.f32 %v3637_v23, %v931_v24  ;;  %v1211_v28 = vmul.f32 %v2824_v22, %v4265_v31  ;;  %v4495_v39 = vld [vmem:[#allocation7 + $0x8] ss:$0 sm:$0xff] }
 0x228   : > { %v4487_v54 = vmul.f32 %v4435_v40, %v4362_v50  ;;  %v4490_v46 = vmul.f32 %v5487_v27, %v1426_v7  ;;  %v884_v57 = vmin.f32 %v844_v36, 6.0  ;;  %v1105_v38 = vadd.f32 %v1073_v5, %v1004_v32 }
 0x229   : > { %v842_v10 = vmax.f32 %v5490_v44, 0.0  ;;  %v4493_v45 = vadd.f32 %v1493_v29, %v1375_v61  ;;  %v1171_v21 = vadd.f32 %v1139_v33, %v1102_v1  ;;  %v1002_v42 = vmul.f32 %v2823_v17, %v4319_v16 }
 0x22a   : > { %v1003_v12 = vmul.f32 %v2823_v17, %v4312_v37  ;;  %v4500_v24 = vmul.f32 %v4495_v39, %v1426_v7  ;;  %v924_v58 = vrot.slane %v884_v57, 7  ;;  %v1421_v43 = vrot.slane %v884_v57, 1  ;;  %v5494_v37 = vld [vmem:[#allocation22_spill] sm:$0xff] }
 0x22b   : > { %v882_v27 = vmin.f32 %v842_v10, 6.0  ;;  %v1240_v13 = vadd.f32 %v1208_v3, %v1171_v21  ;;  %v1103_v36 = vadd.f32 %v1071_v47, %v1002_v42  ;;  %v5492_v32 = vrot.slane %v4211_v52, 1 }
 0x22c   : > { %5491 = vst [vmem:[#allocation35_spill] sm:$0xff] %v4500_v24  ;;  %v1104_v5 = vadd.f32 %v1072_v15, %v1003_v12  ;;  %v5493_v29 = vrot.slane %v4267_v30, 1  ;;  %v928_v16 = vsel %vm927_vm0, %v923_v60, %v924_v58  ;;  %v5495_v7 = vrot.slane %v5494_v37, 7  ;;  %v2825_v24 = vld [vmem:[#allocation7 + $0x7] ss:$0 sm:$0xff] }
 0x22d   : > { %v4518_v47 = vsel %vm1422_vm1, %v1420_v26, %v1421_v43  ;;  %v5497_v15 = vrot.slane %v5494_v37, 1  ;;  %v1309_v33 = vadd.f32 %v4356_v35, %v1240_v13  ;;  %v1142_v10 = vmul.f32 %v3637_v23, %v928_v16 }
 0x22e   : > { %v4508_v1 = vsel %vm1422_vm1, %v5493_v29, %v5492_v32  ;;  %v967_v61 = vsel %vm927_vm0, %v924_v58, %v5495_v7  ;;  %5496 = vst [vmem:[#allocation83_spill] sm:$0xff] %v4518_v47  ;;  %v1209_v21 = vmul.f32 %v2824_v22, %v4267_v30  ;;  %v1349_v42 = vmul.f32 %v3588_v19, %v884_v57  ;;  %v5499_v7 = vld [vmem:[#allocation36_spill] sm:$0xff] }
 0x22f   : > { %v1462_v3 = vsel %vm1422_vm1, %v1421_v43, %v5497_v15  ;;  %v973_v44 = vmul.f32 %v2823_v17, %v967_v61  ;;  %v922_v12 = vrot.slane %v882_v27, 7  ;;  %v1419_v32 = vrot.slane %v882_v27, 1  ;;  %v5502_v61 = vld [vmem:[#allocation24_spill] sm:$0xff]  ;;  %v5503_v15 = vld [vmem:[#allocation41_spill] sm:$0xff] }
 0x230   : > { %v4529_v58 = vmul.f32 %v4495_v39, %v1462_v3  ;;  %v1378_v29 = vadd.f32 %v1346_v9, %v1309_v33  ;;  %v1174_v47 = vadd.f32 %v1142_v10, %v1105_v38  ;;  %v1347_v43 = vmul.f32 %v2825_v24, %v882_v27  ;;  %v5505_v33 = vld [vmem:[#allocation46_spill] sm:$0xff] }
 0x231   : > { %v1074_v37 = vadd.f32 %v5499_v7, %v973_v44  ;;  %v929_v35 = vsel %vm927_vm0, %v922_v12, %v923_v60  ;;  %v930_v13 = vsel %vm927_vm0, %v921_v48, %v922_v12  ;;  %v1424_v19 = vsel %vm1422_vm1, %v1419_v32, %v1420_v26  ;;  %v4544_v60 = vld [vmem:[#allocation7 + $0x5] ss:$0 sm:$0xff]  ;;  %v5510_v7 = vld [vmem:[#allocation26_spill] sm:$0xff] }
 0x232   : > { %5498 = vst [vmem:[#allocation50_spill] sm:$0xff] %v4529_v58  ;;  %v1425_v30 = vsel %vm1422_vm1, %v1418_v0, %v1419_v32  ;;  %v1528_v17 = vadd.f32 %v1496_v25, %v1378_v29  ;;  %v1243_v9 = vadd.f32 %v1211_v28, %v1174_v47  ;;  %v1140_v57 = vmul.f32 %v3637_v23, %v930_v13  ;;  %v5501_v28 = vld [vmem:[#allocation55_spill] sm:$0xff] }
 0x233   : > { %v1143_v22 = vadd.f32 %v1111_v6, %v1074_v37  ;;  %v1141_v38 = vmul.f32 %v3637_v23, %v929_v35  ;;  %v1497_v24 = vmul.f32 %v4435_v40, %v4508_v1  ;;  %v1566_v48 = vmul.f32 %v4544_v60, %v4425_v4  ;;  %v5500_v6 = vld [vmem:[#allocation40_spill] sm:$0xff]  ;;  %v5511_v37 = vld [vmem:[#allocation29_spill] sm:$0xff]  ;;  %v5513_v13 = vld [vmem:[#allocation27_spill] sm:$0xff] }
 0x234   : > { %v4549_v26 = vmul.f32 %v4495_v39, %v1425_v30  ;;  %v4551_v27 = vadd.f32 %v1565_v20, %v1528_v17  ;;  %v1312_v0 = vadd.f32 %v4408_v53, %v1243_v9  ;;  %v1172_v25 = vadd.f32 %v1140_v57, %v1103_v36  ;;  %v5508_v20 = vld [vmem:[#allocation42_spill] sm:$0xff] }
 0x235   : > { %v1144_v16 = vadd.f32 %v5501_v28, %v5500_v6  ;;  %v1173_v23 = vadd.f32 %v1141_v38, %v1104_v5  ;;  %v1212_v47 = vadd.f32 %v5502_v61, %v1143_v22  ;;  %v5504_v3 = vrot.slane %v5503_v15, 1  ;;  %v5515_v57 = vld [vmem:[#allocation34_spill] sm:$0xff]  ;;  %v5517_v28 = vld [vmem:[#allocation45_spill] sm:$0xff] }
 0x236   : > { %v5506_v44 = vrot.slane %v5505_v33, 1  ;;  %v5509_v32 = vrot.slane %v5508_v20, 1  ;;  %v1381_v36 = vadd.f32 %v1349_v42, %v1312_v0  ;;  %v1241_v29 = vadd.f32 %v1209_v21, %v1172_v25  ;;  %v5516_v0 = vld [vmem:[#allocation43_spill] sm:$0xff] }
 0x237   : > { %v1213_v5 = vadd.f32 %v5510_v7, %v1144_v16  ;;  %v5512_v35 = vrot.slane %v5511_v37, 1  ;;  %v5514_v30 = vrot.slane %v5513_v13, 1  ;;  %v1242_v22 = vadd.f32 %v4235_v63, %v1173_v23  ;;  %v5518_v63 = vld [vmem:[#allocation51_spill] sm:$0xff]  ;;  %v5523_v13 = vld [vmem:[#allocation53_spill] sm:$0xff] }
 0x238   : > { %v1452_v10 = vsel %vm1422_vm1, %v5506_v44, %v5504_v3  ;;  %v5507_v12 = vmov %v5506_v44  ;;  %v4578_v9 = vmul.f32 %v4495_v39, %v1424_v19  ;;  %v1281_v38 = vadd.f32 %v5515_v57, %v1212_v47  ;;  %v5520_v3 = vld [vmem:[#allocation56_spill] sm:$0xff] }
 0x239   : > { %v1453_v53 = vsel %vm1422_vm1, %v5509_v32, %v5507_v12  ;;  %v1457_v17 = vsel %vm1422_vm1, %v5514_v30, %v5512_v35  ;;  %v1531_v21 = vadd.f32 %v4487_v54, %v1381_v36  ;;  %v1310_v42 = vadd.f32 %v4416_v2, %v1241_v29  ;;  %v5521_v12 = vld [vmem:[#allocation30_spill] sm:$0xff]  ;;  %v5524_v30 = vld [vmem:[#allocation23_spill] sm:$0xff] }
 0x23a   : > { %v1472_v6 = vmul.f32 %v4435_v40, %v1457_v17  ;;  %v1282_v25 = vadd.f32 %v5516_v0, %v1213_v5  ;;  %v1473_v16 = vmul.f32 %v4435_v40, %v5517_v28  ;;  %v4588_v61 = vadd.f32 %v4331_v8, %v1242_v22  ;;  %v5522_v5 = vld [vmem:[#allocation31_spill] sm:$0xff]  ;;  %v5525_v22 = vld [vmem:[#allocation54_spill] sm:$0xff] }
 0x23b   : > { %v1350_v23 = vadd.f32 %v5518_v63, %v1281_v38  ;;  %v4592_v19 = vmul.f32 %v4435_v40, %v1453_v53  ;;  %v4595_v47 = vmul.f32 %v4435_v40, %v1452_v10  ;;  %v4598_v54 = vadd.f32 %v4490_v46, %v1531_v21  ;;  %v5527_v38 = vld [vmem:[#allocation44_spill] sm:$0xff] }
 0x23c   : > { %v1379_v2 = vadd.f32 %v1347_v43, %v1310_v42  ;;  %v1351_v33 = vadd.f32 %v5520_v3, %v1282_v25  ;;  %v1537_v44 = vmul.f32 %v4544_v60, %v1457_v17  ;;  %v1538_v8 = vmul.f32 %v4544_v60, %v5517_v28  ;;  %v5532_v63 = vld [vmem:[#allocation28_spill] sm:$0xff]  ;;  %v5534_v3 = vld [vmem:[#allocation59_spill] sm:$0xff] }
 0x23d   : > { %5519 = vst [vmem:[#allocation85_spill] sm:$0xff] %v4598_v54  ;;  %v1500_v32 = vadd.f32 %v5521_v12, %v1350_v23  ;;  %v1541_v36 = vmul.f32 %v4544_v60, %v1453_v53  ;;  %v1542_v29 = vmul.f32 %v4544_v60, %v1452_v10  ;;  %v1606_v46 = vmul.f32 %v4495_v39, %v1453_v53 }
 0x23e   : > { %v1529_v7 = vadd.f32 %v1497_v24, %v1379_v2  ;;  %v1501_v37 = vadd.f32 %v5522_v5, %v1351_v33  ;;  %v1607_v43 = vmul.f32 %v4495_v39, %v1452_v10  ;;  %v1214_v17 = vadd.f32 %v5524_v30, %v5523_v13  ;;  %v5535_v33 = vld [vmem:[#allocation37_spill] sm:$0xff]  ;;  %v5539_v30 = vld [vmem:[#allocation62_spill] sm:$0xff] }
 0x23f   : > { %v1569_v35 = vadd.f32 %v1537_v44, %v1500_v32  ;;  %v5526_v57 = vrot.slane %v5525_v22, 1  ;;  %v5528_v21 = vrot.slane %v5527_v38, 1  ;;  %v5530_v0 = vrot.slane %v5503_v15, 1  ;;  %v4641_v15 = vld [vmem:[%s5284_s3] ss:$0 sm:$0xff]  ;;  %v5536_v32 = vld [vmem:[#allocation33_spill] sm:$0xff] }
 0x240   : > { %v4628_v10 = vadd.f32 %v1566_v48, %v1529_v7  ;;  %v1570_v25 = vadd.f32 %v1538_v8, %v1501_v37  ;;  %v5531_v28 = vrot.slane %v5508_v20, 1  ;;  %v5533_v23 = vrot.slane %v5532_v63, 1  ;;  %v5537_v37 = vld [vmem:[#allocation52_spill] sm:$0xff] }
 0x241   : > { %v4618_v42 = vsel %vm1422_vm1, %v5528_v21, %v5526_v57  ;;  %v5529_v24 = vmov %v5528_v21  ;;  %v1503_v44 = vadd.f32 %v5535_v33, %v5534_v3  ;;  %v1638_v12 = vadd.f32 %v1606_v46, %v1569_v35  ;;  %v4669_v21 = vld [vmem:[%s5285_s4] ss:$0 sm:$0xff] }
 0x242   : > { %v4626_v53 = vsel %vm1422_vm1, %v5530_v0, %v5529_v24  ;;  %v1454_v2 = vsel %vm1422_vm1, %v5533_v23, %v5531_v28  ;;  %v1283_v48 = vadd.f32 %v5536_v32, %v1214_v17  ;;  %v1639_v7 = vadd.f32 %v1607_v43, %v1570_v25  ;;  %v5543_v24 = vld [vmem:[#allocation49_spill] sm:$0xff]  ;;  %v5545_v3 = vld [vmem:[#allocation72_spill] sm:$0xff] }
 0x243   : > { %v1540_v8 = vmul.f32 %v4544_v60, %v1454_v2  ;;  %v1608_v20 = vmul.f32 %v4495_v39, %v4626_v53  ;;  %v1609_v5 = vmul.f32 %v4495_v39, %v4618_v42  ;;  %v5538_v13 = vrot.slane %v5537_v37, 1  ;;  %v5544_v28 = vld [vmem:[#allocation65_spill] sm:$0xff] }
 0x244   : > { %v5540_v46 = vrot.slane %v5539_v30, 1  ;;  %v5542_v17 = vrot.slane %v5525_v22, 1  ;;  %v1677_v43 = vmul.f32 %v4641_v15, %v1638_v12  ;;  %v1352_v0 = vadd.f32 %v5543_v24, %v1283_v48  ;;  %v5551_v24 = vld [vmem:[#allocation61_spill] sm:$0xff] }
 0x245   : > { %v1572_v25 = vadd.f32 %v1540_v8, %v1503_v44  ;;  %v1504_v63 = vadd.f32 %v1472_v6, %v5544_v28  ;;  %v1678_v23 = vmul.f32 %v4641_v15, %v1639_v7  ;;  %v1505_v22 = vadd.f32 %v1473_v16, %v5545_v3  ;;  %v5547_v6 = vld [vmem:[#allocation67_spill] sm:$0xff]  ;;  %v5548_v8 = vld [vmem:[#allocation32_spill] sm:$0xff] }
 0x246   : > { %v4655_v35 = vsel %vm1422_vm1, %v5540_v46, %v5538_v13  ;;  %v5541_v57 = vmov %v5540_v46  ;;  %v1716_v32 = vadd.f32 %v4669_v21, %v1677_v43  ;;  %v5546_v13 = vld [vmem:[#allocation25_spill] sm:$0xff]  ;;  %v1218_v7 = vadd.f32 %v5548_v8, %v5547_v6  ;;  %v5553_v43 = vld [vmem:[#allocation39_spill] sm:$0xff] }
 0x247   : > { %v4663_v38 = vsel %vm1422_vm1, %v5542_v17, %v5541_v57  ;;  %v1611_v12 = vmul.f32 %v4495_v39, %v4655_v35  ;;  %v1502_v30 = vadd.f32 %v5546_v13, %v1352_v0  ;;  %v1641_v46 = vadd.f32 %v1609_v5, %v1572_v25  ;;  %v5549_v17 = vld [vmem:[#allocation64_spill] sm:$0xff] }
 0x248   : > { %v1610_v33 = vmul.f32 %v4495_v39, %v4663_v38  ;;  %v1573_v57 = vadd.f32 %v1541_v36, %v1504_v63  ;;  %v1717_v44 = vadd.f32 %v4669_v21, %v1678_v23  ;;  %v1574_v48 = vadd.f32 %v1542_v29, %v1505_v22  ;;  %v5554_v29 = vld [vmem:[#allocation48_spill] sm:$0xff] }
 0x249   : > { %v5550_v16 = vrot.slane %v5549_v17, 1  ;;  %v5552_v28 = vrot.slane %v5551_v24, 1  ;;  %v1748_v58 = vmax.f32 %v1716_v32, 0.0  ;;  %v1571_v54 = vadd.f32 %v5553_v43, %v1502_v30 }
 0x24a   : > { %v1680_v5 = vmul.f32 %v4641_v15, %v1641_v46  ;;  %v1642_v36 = vadd.f32 %v1610_v33, %v1573_v57  ;;  %v1749_v0 = vmax.f32 %v1717_v44, 0.0  ;;  %v1643_v25 = vadd.f32 %v1611_v12, %v1574_v48  ;;  %v5557_v12 = vld [vmem:[#allocation60_spill] sm:$0xff] }
 0x24b   : > { %v4690_v3 = vsel %vm1422_vm1, %v5552_v28, %v5550_v16  ;;  %v1287_v63 = vadd.f32 %v5554_v29, %v1218_v7  ;;  %v5555_v23 = vmov %v5552_v28  ;;  %v5556_v22 = vrot.slane %v5537_v37, 1  ;;  %v5558_v16 = vld [vmem:[#allocation38_spill] sm:$0xff]  ;;  %v5559_v28 = vld [vmem:[#allocation68_spill] sm:$0xff] }
 0x24c   : > { %v1780_v6 = vmin.f32 %v1748_v58, 6.0  ;;  %v1640_v8 = vadd.f32 %v1608_v20, %v1571_v54  ;;  %v1719_v32 = vadd.f32 %v4669_v21, %v1680_v5  ;;  %v1681_v30 = vmul.f32 %v4641_v15, %v1642_v36 }
 0x24d   : > { %v4701_v13 = vsel %vm1422_vm1, %v5556_v22, %v5555_v23  ;;  %v1781_v46 = vmin.f32 %v1749_v0, 6.0  ;;  %v1682_v33 = vmul.f32 %v4641_v15, %v1643_v25  ;;  %v1356_v57 = vadd.f32 %v5557_v12, %v1287_v63 }
 0x24e   : > { %v1475_v44 = vmul.f32 %v4435_v40, %v1454_v2  ;;  %v1679_v48 = vmul.f32 %v4641_v15, %v1640_v8  ;;  %v1751_v37 = vmax.f32 %v1719_v32, 0.0  ;;  %v1720_v7 = vadd.f32 %v4669_v21, %v1681_v30  ;;  %v5560_v32 = vld [vmem:[#allocation63_spill] sm:$0xff] }
 0x24f   : > { %v1543_v58 = vmul.f32 %v4544_v60, %v4626_v53  ;;  %v1812_v54 = vpack.c.bf16 %v1781_v46, %v1780_v6  ;;  %v1721_v20 = vadd.f32 %v4669_v21, %v1682_v33  ;;  %v1506_v24 = vadd.f32 %v5558_v16, %v1356_v57  ;;  %v5562_v46 = vld [vmem:[#allocation73_spill] sm:$0xff] }
 0x250   : > { %v1507_v43 = vadd.f32 %v1475_v44, %v5559_v28  ;;  %v1718_v5 = vadd.f32 %v4669_v21, %v1679_v48  ;;  %v1783_v36 = vmin.f32 %v1751_v37, 6.0  ;;  %v1752_v0 = vmax.f32 %v1720_v7, 0.0 }
 0x251   : > { %v1544_v2 = vmul.f32 %v4544_v60, %v4618_v42  ;;  %2596 = vmatprep.mubr.bf16.mxu1 %v1812_v54  ;;  %v1753_v25 = vmax.f32 %v1721_v20, 0.0  ;;  %v1575_v29 = vadd.f32 %v1543_v58, %v1506_v24  ;;  %v1612_v63 = vmul.f32 %v4495_v39, %v4701_v13  ;;  %v5566_v58 = vld [vmem:[#allocation76_spill] sm:$0xff] }
 0x252   : > { %v1613_v23 = vmul.f32 %v4495_v39, %v4690_v3  ;;  %v1750_v22 = vmax.f32 %v1718_v5, 0.0  ;;  %v1784_v6 = vmin.f32 %v1752_v0, 6.0  ;;  %v5561_v30 = vrot.slane %v5560_v32, 1  ;;  %v5567_v24 = vld [vmem:[#allocation84_spill] sm:$0xff] }
 0x253   : > { %v1576_v8 = vadd.f32 %v1544_v2, %v1507_v43  ;;  %v5563_v33 = vrot.slane %v5562_v46, 1  ;;  %v1785_v57 = vmin.f32 %v1753_v25, 6.0  ;;  %v1644_v44 = vadd.f32 %v1612_v63, %v1575_v29 }
 0x254   : > { %v5565_v37 = vrot.slane %v5549_v17, 1  ;;  %v1508_v54 = vadd.f32 %v4592_v19, %v5566_v58  ;;  %v1782_v20 = vmin.f32 %v1750_v22, 6.0  ;;  %v1509_v28 = vadd.f32 %v4595_v47, %v5567_v24  ;;  %v5568_v22 = vld [vmem:[#allocation78_spill] sm:$0xff] }
 0x255   : > { %v4728_v12 = vsel %vm1422_vm1, %v5563_v33, %v5561_v30  ;;  %v5564_v48 = vmov %v5563_v33  ;;  %v1645_v16 = vadd.f32 %v1613_v23, %v1576_v8  ;;  %v1545_v43 = vmul.f32 %v4544_v60, %v4663_v38  ;;  %v5570_v30 = vld [vmem:[#allocation75_spill] sm:$0xff] }
 0x256   : > { %v4736_v7 = vsel %vm1422_vm1, %v5565_v37, %v5564_v48  ;;  %v1814_v5 = vpack.c.bf16 %v1785_v57, %v1784_v6  ;;  %v1683_v0 = vmul.f32 %v4641_v15, %v1644_v44  ;;  %v1546_v17 = vmul.f32 %v4544_v60, %v4655_v35  ;;  %v5569_v6 = vld [vmem:[#allocation47_spill] sm:$0xff] }
 0x257   : > { %v1614_v2 = vmul.f32 %v4495_v39, %v4736_v7  ;;  %v1813_v25 = vpack.c.bf16 %v1783_v36, %v1782_v20  ;;  %v1684_v19 = vmul.f32 %v4641_v15, %v1645_v16  ;;  %v1577_v29 = vadd.f32 %v1545_v43, %v1508_v54  ;;  %v5572_v33 = vld [vmem:[#allocation71_spill] sm:$0xff] }
 0x258   : > { %v1615_v63 = vmul.f32 %v4495_v39, %v4728_v12  ;;  %v1722_v47 = vadd.f32 %v4669_v21, %v1683_v0  ;;  %v1578_v23 = vadd.f32 %v1546_v17, %v1509_v28  ;;  %v1222_v8 = vadd.f32 %v5569_v6, %v5568_v22  ;;  %v5576_v28 = vld [vmem:[#allocation58_spill] sm:$0xff] }
 0x259   : > { %v5571_v46 = vrot.slane %v5570_v30, 1  ;;  %v5573_v57 = vrot.slane %v5572_v33, 1  ;;  %2597 = vmatmul.mubr.bf16.vlgmr.msra.gmra.mrb[0].mxu1 %v1813_v25  ;;  %v1723_v36 = vadd.f32 %v4669_v21, %v1684_v19  ;;  %v1646_v48 = vadd.f32 %v1614_v2, %v1577_v29 }
 0x25a   : > { %v5575_v58 = vrot.slane %v5560_v32, 1  ;;  %v1478_v20 = vmul.f32 %v4435_v40, %v4626_v53  ;;  %2600 = vmatprep.mubr.bf16.mxu1 %v1814_v5  ;;  %v1754_v16 = vmax.f32 %v1722_v47, 0.0  ;;  %v1647_v24 = vadd.f32 %v1615_v63, %v1578_v23  ;;  %v5577_v5 = vld [vmem:[#allocation70_spill] sm:$0xff]  ;;  %v5578_v63 = vld [vmem:[#allocation79_spill] sm:$0xff] }
 0x25b   : > { %v4761_v44 = vsel %vm1422_vm1, %v5573_v57, %v5571_v46  ;;  %v5574_v37 = vmov %v5573_v57  ;;  %v1291_v43 = vadd.f32 %v5576_v28, %v1222_v8  ;;  %v1479_v0 = vmul.f32 %v4435_v40, %v4618_v42  ;;  %v5579_v57 = vld [vmem:[#allocation74_spill] sm:$0xff] }
 0x25c   : > { %v4770_v54 = vsel %vm1422_vm1, %v5575_v58, %v5574_v37  ;;  %v1755_v17 = vmax.f32 %v1723_v36, 0.0  ;;  %v1685_v2 = vmul.f32 %v4641_v15, %v1646_v48  ;;  %v1547_v32 = vmul.f32 %v4544_v60, %v4701_v13 }
 0x25d   : > { %v1548_v25 = vmul.f32 %v4544_v60, %v4690_v3  ;;  %v1786_v19 = vmin.f32 %v1754_v16, 6.0  ;;  %v1686_v53 = vmul.f32 %v4641_v15, %v1647_v24  ;;  %v1360_v29 = vadd.f32 %v5577_v5, %v1291_v43 }
 0x25e   : > { %v1511_v47 = vadd.f32 %v1479_v0, %v5578_v63  ;;  %v1787_v23 = vmin.f32 %v1755_v17, 6.0  ;;  %v1724_v22 = vadd.f32 %v4669_v21, %v1685_v2  ;;  %v1616_v42 = vmul.f32 %v4495_v39, %v4770_v54 }
 0x25f   : > { %v1617_v6 = vmul.f32 %v4495_v39, %v4761_v44  ;;  %v1725_v8 = vadd.f32 %v4669_v21, %v1686_v53  ;;  %v1510_v46 = vadd.f32 %v1478_v20, %v1360_v29  ;;  %v5580_v36 = vrot.slane %v5579_v57, 1  ;;  %v5584_v53 = vld [vmem:[#allocation86_spill] sm:$0xff] }
 0x260   : > { %v1580_v33 = vadd.f32 %v1548_v25, %v1511_v47  ;;  %v5581_v48 = vrot.slane %v4053_v51, 1  ;;  %v1815_v58 = vpack.c.bf16 %v1787_v23, %v1786_v19  ;;  %v1756_v16 = vmax.f32 %v1724_v22, 0.0  ;;  %v5585_v47 = vld [vmem:[#allocation92_spill] sm:$0xff] }
 0x261   : > { %v5583_v28 = vrot.slane %v5570_v30, 1  ;;  %v1480_v20 = vmul.f32 %v4435_v40, %v4663_v38  ;;  %v1757_v0 = vmax.f32 %v1725_v8, 0.0  ;;  %v1579_v17 = vadd.f32 %v1547_v32, %v1510_v46  ;;  %v5587_v8 = vld [vmem:[#allocation57_spill] sm:$0xff] }
 0x262   : > { %v4797_v37 = vsel %vm1422_vm1, %v5581_v48, %v5580_v36  ;;  %v5582_v24 = vmov %v5581_v48  ;;  %v1649_v2 = vadd.f32 %v1617_v6, %v1580_v33  ;;  %v1481_v25 = vmul.f32 %v4435_v40, %v4655_v35  ;;  %2601 = vmatmul.mubr.bf16.gmra.mrb[4].mxu1 %v1815_v58  ;;  %v5586_v6 = vld [vmem:[#allocation87_spill] sm:$0xff] }
 0x263   : > { %v4805_v43 = vsel %vm1422_vm1, %v5583_v28, %v5582_v24  ;;  %v1788_v19 = vmin.f32 %v1756_v16, 6.0  ;;  %v1512_v5 = vadd.f32 %v1480_v20, %v5584_v53  ;;  %v1549_v51 = vmul.f32 %v4544_v60, %v4736_v7  ;;  %v5588_v16 = vld [vmem:[#allocation69_spill] sm:$0xff]  ;;  %v5590_v20 = vld [vmem:[#allocation82_spill] sm:$0xff] }
 0x264   : > { %v1550_v30 = vmul.f32 %v4544_v60, %v4728_v12  ;;  %v1789_v29 = vmin.f32 %v1757_v0, 6.0  ;;  %v1648_v63 = vadd.f32 %v1616_v42, %v1579_v17  ;;  %v1688_v38 = vmul.f32 %v4641_v15, %v1649_v2 }
 0x265   : > { %v1513_v32 = vadd.f32 %v1481_v25, %v5585_v47  ;;  %v1581_v23 = vadd.f32 %v1549_v51, %v1512_v5  ;;  %v1618_v35 = vmul.f32 %v4495_v39, %v4805_v43  ;;  %v1619_v22 = vmul.f32 %v4495_v39, %v4797_v37 }
 0x266   : > { %v1226_v46 = vadd.f32 %v5587_v8, %v5586_v6  ;;  %v1816_v33 = vpack.c.bf16 %v1789_v29, %v1788_v19  ;;  %v1687_v36 = vmul.f32 %v4641_v15, %v1648_v63  ;;  %v1727_v48 = vadd.f32 %v4669_v21, %v1688_v38  ;;  %v5594_v29 = vld [vmem:[#allocation81_spill] sm:$0xff]  ;;  %v5595_v6 = vld [vmem:[#allocation90_spill] sm:$0xff] }
 0x267   : > { %v1582_v42 = vadd.f32 %v1550_v30, %v1513_v32  ;;  %v1650_v58 = vadd.f32 %v1618_v35, %v1581_v23  ;;  %v5589_v28 = vrot.slane %v4067_v55, 1  ;;  %v5591_v0 = vrot.slane %v5590_v20, 1 }
 0x268   : > { %v1295_v24 = vadd.f32 %v5588_v16, %v1226_v46  ;;  %v5593_v25 = vrot.slane %v5579_v57, 1  ;;  %2604 = vmatprep.mubr.bf16.mxu1 %v1816_v33  ;;  %v1726_v53 = vadd.f32 %v4669_v21, %v1687_v36  ;;  %v1759_v5 = vmax.f32 %v1727_v48, 0.0 }
 0x269   : > { %v4833_v17 = vsel %vm1422_vm1, %v5591_v0, %v5589_v28  ;;  %v5592_v2 = vmov %v5591_v0  ;;  %v1651_v51 = vadd.f32 %v1619_v22, %v1582_v42  ;;  %v1482_v55 = vmul.f32 %v4435_v40, %v4701_v13  ;;  %v5596_v0 = vld [vmem:[#allocation93_spill] sm:$0xff] }
 0x26a   : > { %v4841_v19 = vsel %vm1422_vm1, %v5593_v25, %v5592_v2  ;;  %v1689_v30 = vmul.f32 %v4641_v15, %v1650_v58  ;;  %v1364_v63 = vadd.f32 %v5594_v29, %v1295_v24  ;;  %v1483_v38 = vmul.f32 %v4435_v40, %v4690_v3 }
 0x26b   : > { %v1551_v57 = vmul.f32 %v4544_v60, %v4770_v54  ;;  %v1758_v47 = vmax.f32 %v1726_v53, 0.0  ;;  %v1791_v32 = vmin.f32 %v1759_v5, 6.0  ;;  %v1690_v23 = vmul.f32 %v4641_v15, %v1651_v51 }
 0x26c   : > { %v1552_v35 = vmul.f32 %v4544_v60, %v4761_v44  ;;  %v1728_v22 = vadd.f32 %v4669_v21, %v1689_v30  ;;  %v1514_v13 = vadd.f32 %v1482_v55, %v1364_v63  ;;  %v1515_v8 = vadd.f32 %v1483_v38, %v5595_v6 }
 0x26d   : > { %v1620_v46 = vmul.f32 %v4495_v39, %v4841_v19  ;;  %v1790_v33 = vmin.f32 %v1758_v47, 6.0  ;;  %v1729_v3 = vadd.f32 %v4669_v21, %v1690_v23  ;;  %v1621_v36 = vmul.f32 %v4495_v39, %v4833_v17  ;;  %v5597_v47 = vld [vmem:[#allocation94_spill] sm:$0xff] }
 0x26e   : > { %v1484_v48 = vmul.f32 %v4435_v40, %v4736_v7  ;;  %v1760_v42 = vmax.f32 %v1728_v22, 0.0  ;;  %v1583_v58 = vadd.f32 %v1551_v57, %v1514_v13  ;;  %v1584_v16 = vadd.f32 %v1552_v35, %v1515_v8  ;;  %v5599_v13 = vld [vmem:[#allocation91_spill] sm:$0xff] }
 0x26f   : > { %v1485_v24 = vmul.f32 %v4435_v40, %v4728_v12  ;;  %v1817_v28 = vpack.c.bf16 %v1791_v32, %v1790_v33  ;;  %v1761_v20 = vmax.f32 %v1729_v3, 0.0  ;;  %v1553_v25 = vmul.f32 %v4544_v60, %v4805_v43  ;;  %v5598_v32 = vld [vmem:[#allocation66_spill] sm:$0xff] }
 0x270   : > { %v1516_v2 = vadd.f32 %v1484_v48, %v5596_v0  ;;  %v1792_v53 = vmin.f32 %v1760_v42, 6.0  ;;  %v1652_v5 = vadd.f32 %v1620_v46, %v1583_v58  ;;  %v1653_v51 = vadd.f32 %v1621_v36, %v1584_v16  ;;  %v5602_v36 = vld [vmem:[#allocation80_spill] sm:$0xff]  ;;  %v5603_v0 = vld [vmem:[#allocation89_spill] sm:$0xff] }
 0x271   : > { %v1517_v55 = vadd.f32 %v1485_v24, %v4277_v18  ;;  %2605 = vmatmul.mubr.bf16.gmra.mrb[8].mxu1 %v1817_v28  ;;  %v1793_v7 = vmin.f32 %v1761_v20, 6.0  ;;  %v1554_v30 = vmul.f32 %v4544_v60, %v4797_v37  ;;  %v1622_v12 = vmul.f32 %v4495_v39, %v4275_v41 }
 0x272   : > { %v1585_v29 = vadd.f32 %v1553_v25, %v1516_v2  ;;  %v1691_v63 = vmul.f32 %v4641_v15, %v1652_v5  ;;  %v1692_v38 = vmul.f32 %v4641_v15, %v1653_v51  ;;  %v1623_v57 = vmul.f32 %v4495_v39, %v4402_v49  ;;  %v5604_v5 = vld [vmem:[#allocation95_spill] sm:$0xff] }
 0x273   : > { %v1230_v23 = vadd.f32 %v5598_v32, %v5597_v47  ;;  %v1818_v18 = vpack.c.bf16 %v1793_v7, %v1792_v53  ;;  %v1586_v35 = vadd.f32 %v1554_v30, %v1517_v55  ;;  %v5600_v6 = vrot.slane %v5599_v13, 1 }
 0x274   : > { %v1654_v22 = vadd.f32 %v1622_v12, %v1585_v29  ;;  %v5601_v8 = vrot.slane %v4065_v62, 1  ;;  %v1730_v33 = vadd.f32 %v4669_v21, %v1691_v63  ;;  %v1731_v3 = vadd.f32 %v4669_v21, %v1692_v38 }
 0x275   : > { %v1299_v48 = vadd.f32 %v5602_v36, %v1230_v23  ;;  %v1486_v42 = vmul.f32 %v4435_v40, %v4770_v54  ;;  %2608 = vmatprep.mubr.bf16.mxu1 %v1818_v18  ;;  %v1655_v58 = vadd.f32 %v1623_v57, %v1586_v35  ;;  %v1487_v62 = vmul.f32 %v4435_v40, %v4761_v44 }
 0x276   : > { %v4886_v46 = vsel %vm1422_vm1, %v5601_v8, %v5600_v6  ;;  %v1693_v16 = vmul.f32 %v4641_v15, %v1654_v22  ;;  %v1555_v24 = vmul.f32 %v4544_v60, %v4841_v19  ;;  %v1762_v28 = vmax.f32 %v1730_v33, 0.0  ;;  %v5605_v6 = vld [vmem:[#allocation98_spill] sm:$0xff] }
 0x277   : > { %v1763_v20 = vmax.f32 %v1731_v3, 0.0  ;;  %v1368_v2 = vadd.f32 %v5603_v0, %v1299_v48  ;;  %v1556_v25 = vmul.f32 %v4544_v60, %v4833_v17  ;;  %v1694_v53 = vmul.f32 %v4641_v15, %v1655_v58 }
 0x278   : > { %v1732_v54 = vadd.f32 %v4669_v21, %v1693_v16  ;;  %v1519_v51 = vadd.f32 %v1487_v62, %v5604_v5  ;;  %v1624_v55 = vmul.f32 %v4495_v39, %v4886_v46  ;;  %v1794_v44 = vmin.f32 %v1762_v28, 6.0  ;;  %v5606_v62 = vld [vmem:[#allocation99_spill] sm:$0xff] }
 0x279   : > { %v1795_v7 = vmin.f32 %v1763_v20, 6.0  ;;  %v1518_v30 = vadd.f32 %v1486_v42, %v1368_v2  ;;  %v1625_v29 = vmul.f32 %v4495_v39, %v4372_v56  ;;  %v1733_v12 = vadd.f32 %v4669_v21, %v1694_v53 }
 0x27a   : > { %v1764_v63 = vmax.f32 %v1732_v54, 0.0  ;;  %v1588_v38 = vadd.f32 %v1556_v25, %v1519_v51  ;;  %v1488_v57 = vmul.f32 %v4435_v40, %v4805_v43  ;;  %v1489_v23 = vmul.f32 %v4435_v40, %v4797_v37  ;;  %v5610_v51 = vld [vmem:[#allocation88_spill] sm:$0xff] }
 0x27b   : > { %v1819_v47 = vpack.c.bf16 %v1795_v7, %v1794_v44  ;;  %v1587_v32 = vadd.f32 %v1555_v24, %v1518_v30  ;;  %v1557_v18 = vmul.f32 %v4544_v60, %v4275_v41  ;;  %v1765_v35 = vmax.f32 %v1733_v12, 0.0  ;;  %v5607_v24 = vld [vmem:[#allocation77_spill] sm:$0xff] }
 0x27c   : > { %v1796_v22 = vmin.f32 %v1764_v63, 6.0  ;;  %v1657_v13 = vadd.f32 %v1625_v29, %v1588_v38  ;;  %v1520_v8 = vadd.f32 %v1488_v57, %v5605_v6  ;;  %v1521_v3 = vadd.f32 %v1489_v23, %v4385_v14  ;;  %v5611_v29 = vld [vmem:[#allocation97_spill] sm:$0xff] }
 0x27d   : > { %2609 = vmatmul.mubr.bf16.gmra.mrb[12].mxu1 %v1819_v47  ;;  %v1656_v33 = vadd.f32 %v1624_v55, %v1587_v32  ;;  %v1558_v43 = vmul.f32 %v4544_v60, %v4402_v49  ;;  %v1626_v36 = vmul.f32 %v4495_v39, %v4453_v11  ;;  %v1797_v48 = vmin.f32 %v1765_v35, 6.0  ;;  %v5612_v63 = vld [vmem:[#allocation101_spill] sm:$0xff] }
 0x27e   : > { %v1696_v37 = vmul.f32 %v4641_v15, %v1657_v13  ;;  %v1589_v42 = vadd.f32 %v1557_v18, %v1520_v8  ;;  %v1627_v41 = vmul.f32 %v4495_v39, %v4508_v1  ;;  %v1234_v28 = vadd.f32 %v5607_v24, %v5606_v62  ;;  %v5614_v62 = vld [vmem:[#allocation104_spill] sm:$0xff] }
 0x27f   : > { %v1695_v58 = vmul.f32 %v4641_v15, %v1656_v33  ;;  %v1590_v16 = vadd.f32 %v1558_v43, %v1521_v3  ;;  %v5608_v14 = vrot.slane %v4265_v31, 1  ;;  %v5609_v49 = vrot.slane %v4211_v52, 1  ;;  %v5615_v24 = vld [vmem:[#allocation96_spill] sm:$0xff] }
 0x280   : > { %v1820_v0 = vpack.c.bf16 %v1797_v48, %v1796_v22  ;;  %v1735_v2 = vadd.f32 %v4669_v21, %v1696_v37  ;;  %v1658_v25 = vadd.f32 %v1626_v36, %v1589_v42  ;;  %v1490_v53 = vmul.f32 %v4435_v40, %v4841_v19  ;;  %v5613_v37 = vld [vmem:[#allocation103_spill] sm:$0xff] }
 0x281   : > { %v4933_v20 = vsel %vm1422_vm1, %v5609_v49, %v5608_v14  ;;  %v1734_v54 = vadd.f32 %v4669_v21, %v1695_v58  ;;  %v1659_v5 = vadd.f32 %v1627_v41, %v1590_v16  ;;  %v1303_v55 = vadd.f32 %v5610_v51, %v1234_v28 }
 0x282   : > { %v1491_v31 = vmul.f32 %v4435_v40, %v4833_v17  ;;  %2612 = vmatprep.mubr.bf16.mxu1 %v1820_v0  ;;  %v1767_v52 = vmax.f32 %v1735_v2, 0.0  ;;  %v1697_v34 = vmul.f32 %v4641_v15, %v1658_v25  ;;  %v1559_v44 = vmul.f32 %v4544_v60, %v4886_v46  ;;  %v5616_v25 = vld [vmem:[#allocation100_spill] sm:$0xff] }
 0x283   : > { %v1560_v7 = vmul.f32 %v4544_v60, %v4372_v56  ;;  %v1766_v30 = vmax.f32 %v1734_v54, 0.0  ;;  %v1698_v19 = vmul.f32 %v4641_v15, %v1659_v5  ;;  %v1372_v12 = vadd.f32 %v5611_v29, %v1303_v55  ;;  %v5617_v55 = vld [vmem:[#allocation102_spill] sm:$0xff] }
 0x284   : > { %v1523_v38 = vadd.f32 %v1491_v31, %v5612_v63  ;;  %v1799_v57 = vmin.f32 %v1767_v52, 6.0  ;;  %v1736_v17 = vadd.f32 %v4669_v21, %v1697_v34  ;;  %v1628_v47 = vmul.f32 %v4495_v39, %v4933_v20 }
 0x285   : > { %v1629_v32 = vmul.f32 %v4495_v39, %v4362_v50  ;;  %v1798_v23 = vmin.f32 %v1766_v30, 6.0  ;;  %v1737_v18 = vadd.f32 %v4669_v21, %v1698_v19  ;;  %v1522_v56 = vadd.f32 %v1490_v53, %v1372_v12  ;;  %v5618_v19 = vld [vmem:[#allocation106_spill] sm:$0xff] }
 0x286   : > { %v1592_v35 = vadd.f32 %v1560_v7, %v1523_v38  ;;  %v1768_v22 = vmax.f32 %v1736_v17, 0.0  ;;  %v1561_v13 = vmul.f32 %v4544_v60, %v4453_v11  ;;  %v1562_v6 = vmul.f32 %v4544_v60, %v4508_v1 }
 0x287   : > { %v1630_v8 = vmul.f32 %v4495_v39, %v4429_v59  ;;  %v1821_v33 = vpack.c.bf16 %v1799_v57, %v1798_v23  ;;  %v1769_v3 = vmax.f32 %v1737_v18, 0.0  ;;  %v1591_v43 = vadd.f32 %v1559_v44, %v1522_v56 }
 0x288   : > { %v1661_v36 = vadd.f32 %v1629_v32, %v1592_v35  ;;  %v1800_v48 = vmin.f32 %v1768_v22, 6.0  ;;  %v1593_v42 = vadd.f32 %v1561_v13, %v5613_v37  ;;  %v1594_v41 = vadd.f32 %v1562_v6, %v4493_v45  ;;  %v5619_v32 = vld [vmem:[#allocation35_spill] sm:$0xff]  ;;  %v5620_v35 = vld [vmem:[#allocation105_spill] sm:$0xff] }
 0x289   : > { %v1631_v58 = vmul.f32 %v4495_v39, %v4425_v4  ;;  %2613 = vmatmul.mubr.bf16.gmra.mrb[16].mxu1 %v1821_v33  ;;  %v1801_v11 = vmin.f32 %v1769_v3, 6.0  ;;  %v1660_v16 = vadd.f32 %v1628_v47, %v1591_v43  ;;  %v1307_v59 = vadd.f32 %v5615_v24, %v5614_v62 }
 0x28a   : > { %v1700_v1 = vmul.f32 %v4641_v15, %v1661_v36  ;;  %v1662_v28 = vadd.f32 %v1630_v8, %v1593_v42  ;;  %v1494_v49 = vmul.f32 %v4435_v40, %v4886_v46  ;;  %v1563_v0 = vmul.f32 %v4544_v60, %v4933_v20  ;;  %v5621_v42 = vld [vmem:[#allocation85_spill] sm:$0xff] }
 0x28b   : > { %v1663_v14 = vadd.f32 %v1631_v58, %v1594_v41  ;;  %v1822_v45 = vpack.c.bf16 %v1801_v11, %v1800_v48  ;;  %v1699_v2 = vmul.f32 %v4641_v15, %v1660_v16  ;;  %v1376_v53 = vadd.f32 %v5616_v25, %v1307_v59  ;;  %v5622_v41 = vld [vmem:[#allocation50_spill] sm:$0xff] }
 0x28c   : > { %v1739_v4 = vadd.f32 %v4669_v21, %v1700_v1  ;;  %v1701_v54 = vmul.f32 %v4641_v15, %v1662_v28  ;;  %v1564_v51 = vmul.f32 %v4544_v60, %v4362_v50  ;;  %v1632_v46 = vmul.f32 %v4495_v39, %v5617_v55 }
 0x28d   : > { %v1702_v5 = vmul.f32 %v4641_v15, %v1663_v14  ;;  %2616 = vmatprep.mubr.bf16.mxu1 %v1822_v45  ;;  %v1738_v31 = vadd.f32 %v4669_v21, %v1699_v2  ;;  %v1526_v34 = vadd.f32 %v1494_v49, %v1376_v53  ;;  %v1666_v44 = vadd.f32 %v4549_v26, %v4551_v27 }
 0x28e   : > { %v1771_v52 = vmax.f32 %v1739_v4, 0.0  ;;  %v1740_v7 = vadd.f32 %v4669_v21, %v1701_v54  ;;  %v1596_v29 = vadd.f32 %v1564_v51, %v5618_v19  ;;  %v1667_v50 = vadd.f32 %v4578_v9, %v4628_v10  ;;  %v5028_v19 = vld [vmem:[%s5627_s16] ss:$0 sm:$0xff]  ;;  %s2963_s16 = scalar_lea.vmem %s2962_s19, 8192 }
 0x28f   : > { %v1741_v30 = vadd.f32 %v4669_v21, %v1702_v5  ;;  %v1770_v12 = vmax.f32 %v1738_v31, 0.0  ;;  %v1595_v38 = vadd.f32 %v1563_v0, %v1526_v34  ;;  %v1705_v57 = vmul.f32 %v4641_v15, %v1666_v44  ;;  %v2828_v44 = vld [vmem:[%s3403_s20 + $0x10] sm:$0xff]  }
 0x290   : > { %v1803_v63 = vmin.f32 %v1771_v52, 6.0  ;;  %v1772_v17 = vmax.f32 %v1740_v7, 0.0  ;;  %v1665_v23 = vadd.f32 %v5619_v32, %v1596_v29  ;;  %v1706_v26 = vmul.f32 %v4641_v15, %v1667_v50  ;;  %v2827_v52 = vld [vmem:[%s3403_s20 + $0x18] sm:$0xff]  }
 0x291   : > { %v1773_v47 = vmax.f32 %v1741_v30, 0.0  ;;  %v1802_v27 = vmin.f32 %v1770_v12, 6.0  ;;  %v1664_v18 = vadd.f32 %v1632_v46, %v1595_v38  ;;  %v1744_v56 = vadd.f32 %v4669_v21, %v1705_v57 }
 0x292   : > { %v1380_v22 = vadd.f32 %v5620_v35, %v4588_v61  ;;  %v1804_v13 = vmin.f32 %v1772_v17, 6.0  ;;  %v1704_v10 = vmul.f32 %v4641_v15, %v1665_v23  ;;  %v1745_v6 = vadd.f32 %v4669_v21, %v1706_v26 }
 0x293   : > { %v1805_v9 = vmin.f32 %v1773_v47, 6.0  ;;  %v1823_v8 = vpack.c.bf16 %v1803_v63, %v1802_v27  ;;  %v1703_v33 = vmul.f32 %v4641_v15, %v1664_v18  ;;  %v1776_v3 = vmax.f32 %v1744_v56, 0.0 }
 0x294   : > { %v1498_v43 = vmul.f32 %v4435_v40, %v4933_v20  ;;  %v1743_v48 = vadd.f32 %v4669_v21, %v1704_v10  ;;  %v1777_v37 = vmax.f32 %v1745_v6, 0.0  ;;  %v1669_v61 = vadd.f32 %v5622_v41, %v5621_v42  ;;  %v5623_v20 = vld [vmem:[#allocation83_spill] sm:$0xff] }
 0x295   : > { %v1824_v36 = vpack.c.bf16 %v1805_v9, %v1804_v13  ;;  %v1567_v58 = vmul.f32 %v4544_v60, %v5617_v55  ;;  %2617 = vmatmul.mubr.bf16.gmra.mrb[20].mxu1 %v1823_v8  ;;  %v1742_v11 = vadd.f32 %v4669_v21, %v1703_v33  ;;  %v1808_v62 = vmin.f32 %v1776_v3, 6.0  ;;  %v2829_v13 = vld [vmem:[%s3403_s20 + $0x28] sm:$0xff]   ;;  %v2830_v8 = vld [vmem:[%s3403_s20 + $0x20] sm:$0xff]  }
 0x296   : > { %v1530_v16 = vadd.f32 %v1498_v43, %v1380_v22  ;;  %v1775_v1 = vmax.f32 %v1743_v48, 0.0  ;;  %v1809_v24 = vmin.f32 %v1777_v37, 6.0  ;;  %v1708_v40 = vmul.f32 %v4641_v15, %v1669_v61 }
 0x297   : > { %2620 = vmatprep.mubr.bf16.mxu1 %v1824_v36  ;;  %v1636_v59 = vmul.f32 %v4495_v39, %v5623_v20  ;;  %v1774_v28 = vmax.f32 %v1742_v11, 0.0  ;;  %v5625_v46 = vlaneseq  ;;  %v2133_v34 = vunpack.c.l.bf16 %v2827_v52 }
 0x298   : > { %v1599_v14 = vadd.f32 %v1567_v58, %v1530_v16  ;;  %v1807_v49 = vmin.f32 %v1775_v1, 6.0  ;;  %v1826_v0 = vpack.c.bf16 %v1809_v24, %v1808_v62  ;;  %v1747_v60 = vadd.f32 %v4669_v21, %v1708_v40 }
 0x299   : > { %v1806_v45 = vmin.f32 %v1774_v28, 6.0  ;;  %v5014_v31 = vand.u32 127, %v5625_v46  ;;  %v2134_v7 = vunpack.c.h.bf16 %v2827_v52  ;;  %v2132_v29 = vunpack.c.h.bf16 %v2828_v44 }
 0x29a   : > { %v1668_v2 = vadd.f32 %v1636_v59, %v1599_v14  ;;  %v1779_v53 = vmax.f32 %v1747_v60, 0.0  ;;  %v2137_v9 = vunpack.c.l.bf16 %v2829_v13  ;;  %v2135_v33 = vunpack.c.l.bf16 %v2830_v8 }
 0x29b   : > { %v1825_v4 = vpack.c.bf16 %v1807_v49, %v1806_v45  ;;  %vm2165_vm2 = vcmp.lt.s32.totalorder %v5014_v31, 4  ;;  %v2138_v43 = vunpack.c.h.bf16 %v2829_v13  ;;  %v2136_v37 = vunpack.c.h.bf16 %v2830_v8 }
 0x29c   : > { %v1707_v25 = vmul.f32 %v4641_v15, %v1668_v2  ;;  %v1811_v5 = vmin.f32 %v1779_v53, 6.0  ;;  %v5021_v15 = vld [vmem:[%s5626_s30] ss:$0 sm:$0xff]  ;;  %v2168_v63 = vsel %vm2165_vm2, %v2133_v34, 0.0  ;;  %v2169_v27 = vsel %vm2165_vm2, %v2134_v7, 0.0  ;;  %v2832_v53 = vld [vmem:[%s3403_s20 + $0x30] sm:$0xff]  }
 0x29d   : > { %2621 = vmatmul.mubr.bf16.gmra.mrb[24].mxu1 %v1825_v4  ;;  %v2167_v22 = vsel %vm2165_vm2, %v2132_v29, 0.0  ;;  %v2172_v61 = vsel %vm2165_vm2, %v2137_v9, 0.0  ;;  %v2170_v1 = vsel %vm2165_vm2, %v2135_v33, 0.0  ;;  %v2173_v20 = vsel %vm2165_vm2, %v2138_v43, 0.0  ;;  %v2831_v4 = vld [vmem:[%s3403_s20 + $0x38] sm:$0xff]   ;;  %s2957_s30 = scalar_lea.vmem %s5208_s5, 4096 }
 0x29e   : > { %v1746_v54 = vadd.f32 %v4669_v21, %v1707_v25  ;;  %2624 = vmatprep.mubr.bf16.mxu1 %v1826_v0  ;;  %v2131_v21 = vunpack.c.l.bf16 %v2828_v44  ;;  %v2171_v49 = vsel %vm2165_vm2, %v2136_v37, 0.0  ;;  %v2141_v25 = vunpack.c.l.bf16 %v2831_v4  ;;  %p2958_p4 = scmp.ne.s32.totalorder %s5208_s5, %s2957_s30  ;;  %p2965_p11 = scmp.lt.s32.totalorder %s2963_s16, %s2957_s30 }
 0x2a0   : > { %v1778_v39 = vmax.f32 %v1746_v54, 0.0  ;;  %v2166_v47 = vsel %vm2165_vm2, %v2131_v21, 0.0  ;;  %v2139_v54 = vunpack.c.l.bf16 %v2832_v53  ;;  %v2176_v52 = vsel %vm2165_vm2, %v2141_v25, 0.0  ;;  %p2966_p0 = por %p2965_p11, %p2964_p13 }
 0x2a2   : > { %v1810_v51 = vmin.f32 %v1778_v39, 6.0  ;;  %v2142_v39 = vunpack.c.h.bf16 %v2831_v4  ;;  %v2174_v7 = vsel %vm2165_vm2, %v2139_v54, 0.0 }
 0x2a4   : > { %v1827_v55 = vpack.c.bf16 %v1811_v5, %v1810_v51  ;;  %v2140_v51 = vunpack.c.h.bf16 %v2832_v53 }
 0x2a6   : > { %2625 = vmatmul.mubr.bf16.gmra.mrb[28].mxu1 %v1827_v55 }
 0x32c   : > { %v2598_v30 = vpop.f32.mrb[0].mxu1 }
 0x32d   : > { %v2062_v50 = vmul.f32 %v2598_v30, %v5021_v15  ;;  %v1926_v12 = vpop.f32.mrb[1].mxu1 }
 0x32e   : > { %v2060_v38 = vmul.f32 %v5021_v15, %v1926_v12  ;;  %v2599_v57 = vpop.f32.mrb[2].mxu1  ;;  %v2177_v12 = vsel %vm2165_vm2, %v2142_v39, 0.0 }
 0x32f   : > { %v2101_v17 = vadd.f32 %v5028_v19, %v2062_v50  ;;  %v2063_v32 = vmul.f32 %v2599_v57, %v5021_v15  ;;  %v1929_v23 = vpop.f32.mrb[3].mxu1 }
 0x330   : > { %v2099_v26 = vadd.f32 %v5028_v19, %v2060_v38  ;;  %v2061_v18 = vmul.f32 %v5021_v15, %v1929_v23 }
 0x331   : > { %v2200_v56 = vadd.f32 %v2168_v63, %v2101_v17  ;;  %v2102_v35 = vadd.f32 %v5028_v19, %v2063_v32  ;;  %v2175_v17 = vsel %vm2165_vm2, %v2140_v51, 0.0 }
 0x332   : > { %v2198_v10 = vadd.f32 %v2166_v47, %v2099_v26  ;;  %v2100_v6 = vadd.f32 %v5028_v19, %v2061_v18 }
 0x333   : > { %2232 = vst [vmem:[%s5050_s2 + $0x10] sm:$0xff] %v2200_v56  ;;  %v2201_v3 = vadd.f32 %v2169_v27, %v2102_v35  ;;  %v2833_v27 = vld [vmem:[%s3403_s20 + $0x48] sm:$0xff]   ;;  %v2834_v56 = vld [vmem:[%s3403_s20 + $0x40] sm:$0xff]  }
 0x334   : > { %2230 = vst [vmem:[%s5050_s2] sm:$0xff] %v2198_v10  ;;  %v2199_v36 = vadd.f32 %v2167_v22, %v2100_v6  ;;  %v2145_v18 = vunpack.c.l.bf16 %v2833_v27  ;;  %v2143_v35 = vunpack.c.l.bf16 %v2834_v56  ;;  %v2146_v22 = vunpack.c.h.bf16 %v2833_v27 }
 0x335   : > { %v2602_v48 = vpop.f32.mrb[4].mxu1  ;;  %2233 = vst [vmem:[%s5050_s2 + $0x18] sm:$0xff] %v2201_v3  ;;  %v2144_v9 = vunpack.c.h.bf16 %v2834_v56 }
 0x336   : > { %v2066_v42 = vmul.f32 %v2602_v48, %v5021_v15  ;;  %v1942_v41 = vpop.f32.mrb[5].mxu1  ;;  %2231 = vst [vmem:[%s5050_s2 + $0x8] sm:$0xff] %v2199_v36  ;;  %v2180_v8 = vsel %vm2165_vm2, %v2145_v18, 0.0  ;;  %v2178_v36 = vsel %vm2165_vm2, %v2143_v35, 0.0 }
 0x337   : > { %v2064_v58 = vmul.f32 %v5021_v15, %v1942_v41  ;;  %v2603_v11 = vpop.f32.mrb[6].mxu1  ;;  %v2181_v41 = vsel %vm2165_vm2, %v2146_v22, 0.0 }
 0x338   : > { %v2105_v16 = vadd.f32 %v5028_v19, %v2066_v42  ;;  %v2067_v62 = vmul.f32 %v2603_v11, %v5021_v15  ;;  %v1945_v24 = vpop.f32.mrb[7].mxu1 }
 0x339   : > { %v2103_v40 = vadd.f32 %v5028_v19, %v2064_v58  ;;  %v2065_v59 = vmul.f32 %v5021_v15, %v1945_v24 }
 0x33a   : > { %v2204_v28 = vadd.f32 %v2172_v61, %v2105_v16  ;;  %v2106_v14 = vadd.f32 %v5028_v19, %v2067_v62  ;;  %v2179_v16 = vsel %vm2165_vm2, %v2144_v9, 0.0 }
 0x33b   : > { %v2202_v0 = vadd.f32 %v2170_v1, %v2103_v40  ;;  %v2104_v60 = vadd.f32 %v5028_v19, %v2065_v59 }
 0x33c   : > { %2236 = vst [vmem:[%s5050_s2 + $0x30] sm:$0xff] %v2204_v28  ;;  %v2205_v45 = vadd.f32 %v2173_v20, %v2106_v14  ;;  %v2835_v20 = vld [vmem:[%s3403_s20 + $0x58] sm:$0xff]   ;;  %v2836_v28 = vld [vmem:[%s3403_s20 + $0x50] sm:$0xff]  }
 0x33d   : > { %2234 = vst [vmem:[%s5050_s2 + $0x20] sm:$0xff] %v2202_v0  ;;  %v2203_v2 = vadd.f32 %v2171_v49, %v2104_v60  ;;  %v2149_v59 = vunpack.c.l.bf16 %v2835_v20  ;;  %v2147_v14 = vunpack.c.l.bf16 %v2836_v28  ;;  %v2150_v49 = vunpack.c.h.bf16 %v2835_v20 }
 0x33e   : > { %2237 = vst [vmem:[%s5050_s2 + $0x38] sm:$0xff] %v2205_v45  ;;  %v2148_v60 = vunpack.c.h.bf16 %v2836_v28 }
 0x33f   : > { %2235 = vst [vmem:[%s5050_s2 + $0x28] sm:$0xff] %v2203_v2  ;;  %v2184_v4 = vsel %vm2165_vm2, %v2149_v59, 0.0  ;;  %v2182_v39 = vsel %vm2165_vm2, %v2147_v14, 0.0 }
 0x344   : > { %v2606_v5 = vpop.f32.mrb[8].mxu1 }
 0x345   : > { %v2070_v55 = vmul.f32 %v2606_v5, %v5021_v15  ;;  %v1958_v46 = vpop.f32.mrb[9].mxu1 }
 0x346   : > { %v2068_v34 = vmul.f32 %v5021_v15, %v1958_v46  ;;  %v2607_v44 = vpop.f32.mrb[10].mxu1  ;;  %v2185_v46 = vsel %vm2165_vm2, %v2150_v49, 0.0 }
 0x347   : > { %v2109_v21 = vadd.f32 %v5028_v19, %v2070_v55  ;;  %v2071_v30 = vmul.f32 %v2607_v44, %v5021_v15  ;;  %v1961_v29 = vpop.f32.mrb[11].mxu1 }
 0x348   : > { %v2107_v50 = vadd.f32 %v5028_v19, %v2068_v34  ;;  %v2069_v63 = vmul.f32 %v5021_v15, %v1961_v29 }
 0x349   : > { %v2208_v38 = vadd.f32 %v2176_v52, %v2109_v21  ;;  %v2110_v57 = vadd.f32 %v5028_v19, %v2071_v30  ;;  %v2183_v21 = vsel %vm2165_vm2, %v2148_v60, 0.0 }
 0x34a   : > { %v2206_v47 = vadd.f32 %v2174_v7, %v2107_v50  ;;  %v2108_v32 = vadd.f32 %v5028_v19, %v2069_v63 }
 0x34b   : > { %2240 = vst [vmem:[%s5050_s2 + $0x50] sm:$0xff] %v2208_v38  ;;  %v2209_v23 = vadd.f32 %v2177_v12, %v2110_v57  ;;  %v2837_v12 = vld [vmem:[%s3403_s20 + $0x68] sm:$0xff]   ;;  %v2838_v38 = vld [vmem:[%s3403_s20 + $0x60] sm:$0xff]  }
 0x34c   : > { %2238 = vst [vmem:[%s5050_s2 + $0x40] sm:$0xff] %v2206_v47  ;;  %v2207_v26 = vadd.f32 %v2175_v17, %v2108_v32  ;;  %v2153_v63 = vunpack.c.l.bf16 %v2837_v12  ;;  %v2151_v57 = vunpack.c.l.bf16 %v2838_v38  ;;  %v2154_v17 = vunpack.c.h.bf16 %v2837_v12 }
 0x34d   : > { %2241 = vst [vmem:[%s5050_s2 + $0x58] sm:$0xff] %v2209_v23  ;;  %v2152_v32 = vunpack.c.h.bf16 %v2838_v38 }
 0x34e   : > { %2239 = vst [vmem:[%s5050_s2 + $0x48] sm:$0xff] %v2207_v26  ;;  %v2188_v27 = vsel %vm2165_vm2, %v2153_v63, 0.0  ;;  %v2186_v22 = vsel %vm2165_vm2, %v2151_v57, 0.0 }
 0x350   : > { %v2610_v13 = vpop.f32.mrb[12].mxu1 }
 0x351   : > { %v2074_v10 = vmul.f32 %v2610_v13, %v5021_v15  ;;  %v1974_v6 = vpop.f32.mrb[13].mxu1 }
 0x352   : > { %v2072_v33 = vmul.f32 %v5021_v15, %v1974_v6  ;;  %v2611_v3 = vpop.f32.mrb[14].mxu1  ;;  %v2189_v6 = vsel %vm2165_vm2, %v2154_v17, 0.0 }
 0x353   : > { %v2113_v43 = vadd.f32 %v5028_v19, %v2074_v10  ;;  %v2075_v48 = vmul.f32 %v2611_v3, %v5021_v15  ;;  %v1977_v37 = vpop.f32.mrb[15].mxu1 }
 0x354   : > { %v2111_v42 = vadd.f32 %v5028_v19, %v2072_v33  ;;  %v2073_v61 = vmul.f32 %v5021_v15, %v1977_v37 }
 0x355   : > { %v2212_v58 = vadd.f32 %v2180_v8, %v2113_v43  ;;  %v2114_v11 = vadd.f32 %v5028_v19, %v2075_v48  ;;  %v2187_v43 = vsel %vm2165_vm2, %v2152_v32, 0.0 }
 0x356   : > { %v2210_v1 = vadd.f32 %v2178_v36, %v2111_v42  ;;  %v2112_v62 = vadd.f32 %v5028_v19, %v2073_v61  ;;  %v2839_v36 = vld [vmem:[%s3403_s20 + $0x78] sm:$0xff]  }
 0x357   : > { %2244 = vst [vmem:[%s5050_s2 + $0x70] sm:$0xff] %v2212_v58  ;;  %v2213_v24 = vadd.f32 %v2181_v41, %v2114_v11  ;;  %v2157_v48 = vunpack.c.l.bf16 %v2839_v36  ;;  %v2840_v41 = vld [vmem:[%s3403_s20 + $0x70] sm:$0xff]   ;;  %v2158_v11 = vunpack.c.h.bf16 %v2839_v36 }
 0x358   : > { %2242 = vst [vmem:[%s5050_s2 + $0x60] sm:$0xff] %v2210_v1  ;;  %v2211_v40 = vadd.f32 %v2179_v16, %v2112_v62  ;;  %v2155_v61 = vunpack.c.l.bf16 %v2840_v41  ;;  %v2156_v62 = vunpack.c.h.bf16 %v2840_v41 }
 0x359   : > { %2245 = vst [vmem:[%s5050_s2 + $0x78] sm:$0xff] %v2213_v24  ;;  %v2192_v20 = vsel %vm2165_vm2, %v2157_v48, 0.0 }
 0x35a   : > { %2243 = vst [vmem:[%s5050_s2 + $0x68] sm:$0xff] %v2211_v40  ;;  %v2190_v49 = vsel %vm2165_vm2, %v2155_v61, 0.0 }
 0x35c   : > { %v2614_v0 = vpop.f32.mrb[16].mxu1 }
 0x35d   : > { %v2078_v45 = vmul.f32 %v2614_v0, %v5021_v15  ;;  %v1990_v2 = vpop.f32.mrb[17].mxu1 }
 0x35e   : > { %v2076_v25 = vmul.f32 %v5021_v15, %v1990_v2  ;;  %v2615_v53 = vpop.f32.mrb[18].mxu1  ;;  %v2193_v2 = vsel %vm2165_vm2, %v2158_v11, 0.0 }
 0x35f   : > { %v2117_v54 = vadd.f32 %v5028_v19, %v2078_v45  ;;  %v2079_v5 = vmul.f32 %v2615_v53, %v5021_v15  ;;  %v1993_v51 = vpop.f32.mrb[19].mxu1 }
 0x360   : > { %v2115_v55 = vadd.f32 %v5028_v19, %v2076_v25  ;;  %v2077_v52 = vmul.f32 %v5021_v15, %v1993_v51 }
 0x361   : > { %v2216_v34 = vadd.f32 %v2184_v4, %v2117_v54  ;;  %v2118_v44 = vadd.f32 %v5028_v19, %v2079_v5  ;;  %v2191_v54 = vsel %vm2165_vm2, %v2156_v62, 0.0 }
 0x362   : > { %v2214_v7 = vadd.f32 %v2182_v39, %v2115_v55  ;;  %v2116_v30 = vadd.f32 %v5028_v19, %v2077_v52  ;;  %v2841_v39 = vld [vmem:[%s3403_s20 + $0x88] sm:$0xff]  }
 0x363   : > { %2248 = vst [vmem:[%s5050_s2 + $0x90] sm:$0xff] %v2216_v34  ;;  %v2217_v29 = vadd.f32 %v2185_v46, %v2118_v44  ;;  %v2161_v5 = vunpack.c.l.bf16 %v2841_v39  ;;  %v2842_v46 = vld [vmem:[%s3403_s20 + $0x80] sm:$0xff]   ;;  %v2162_v44 = vunpack.c.h.bf16 %v2841_v39  ;;  %s5629_s20 = sld [smem:[#allocation18_spill]] }
 0x364   : > { %2246 = vst [vmem:[%s5050_s2 + $0x80] sm:$0xff] %v2214_v7  ;;  %v2215_v50 = vadd.f32 %v2183_v21, %v2116_v30  ;;  %v2159_v52 = vunpack.c.l.bf16 %v2842_v46  ;;  %v2160_v30 = vunpack.c.h.bf16 %v2842_v46 }
 0x365   : > { %2249 = vst [vmem:[%s5050_s2 + $0x98] sm:$0xff] %v2217_v29  ;;  %v2196_v12 = vsel %vm2165_vm2, %v2161_v5, 0.0 }
 0x366   : > { %2247 = vst [vmem:[%s5050_s2 + $0x88] sm:$0xff] %v2215_v50  ;;  %v2194_v17 = vsel %vm2165_vm2, %v2159_v52, 0.0 }
 0x368   : > { %v2618_v47 = vpop.f32.mrb[20].mxu1 }
 0x369   : > { %v2082_v23 = vmul.f32 %v2618_v47, %v5021_v15  ;;  %v2006_v26 = vpop.f32.mrb[21].mxu1  ;;  %p5631_p3 = scmp.ne.s32.totalorder %s5629_s20, 0 }
 0x36a   : > { %v2080_v18 = vmul.f32 %v5021_v15, %v2006_v26  ;;  %v2619_v56 = vpop.f32.mrb[22].mxu1  ;;  %v2197_v26 = vsel %vm2165_vm2, %v2162_v44, 0.0 }
 0x36b   : > { %v2121_v35 = vadd.f32 %v5028_v19, %v2082_v23  ;;  %v2083_v13 = vmul.f32 %v2619_v56, %v5021_v15  ;;  %v2009_v9 = vpop.f32.mrb[23].mxu1  ;;  %p2959_p7 = pnand %p2958_p4, %p5631_p3 }
 0x36c   : > { %v2119_v10 = vadd.f32 %v5028_v19, %v2080_v18  ;;  %v2081_v8 = vmul.f32 %v5021_v15, %v2009_v9 }
 0x36d   : > { %v2220_v33 = vadd.f32 %v2188_v27, %v2121_v35  ;;  %v2122_v3 = vadd.f32 %v5028_v19, %v2083_v13  ;;  %v2195_v35 = vsel %vm2165_vm2, %v2160_v30, 0.0  ;;  %p2960_p9 = pneg %p2959_p7 }
 0x36e   : > { %v2218_v37 = vadd.f32 %v2186_v22, %v2119_v10  ;;  %v2120_v42 = vadd.f32 %v5028_v19, %v2081_v8 }
 0x36f   : > { %2252 = vst [vmem:[%s5050_s2 + $0xb0] sm:$0xff] %v2220_v33  ;;  %v2221_v58 = vadd.f32 %v2189_v6, %v2122_v3  ;;  %p2967_p5 = pnand %p2966_p0, %p2960_p9 }
 0x370   : > { %2250 = vst [vmem:[%s5050_s2 + $0xa0] sm:$0xff] %v2218_v37  ;;  %v2219_v16 = vadd.f32 %v2187_v43, %v2120_v42  ;;  %v2622_v1 = vpop.f32.mrb[24].mxu1 }
 0x371   : > { %2253 = vst [vmem:[%s5050_s2 + $0xb8] sm:$0xff] %v2221_v58  ;;  %v2086_v24 = vmul.f32 %v2622_v1, %v5021_v15  ;;  %v2022_v40 = vpop.f32.mrb[25].mxu1 }
 0x372   : > { %2251 = vst [vmem:[%s5050_s2 + $0xa8] sm:$0xff] %v2219_v16  ;;  %v2084_v59 = vmul.f32 %v5021_v15, %v2022_v40  ;;  %v2623_v28 = vpop.f32.mrb[26].mxu1 }
 0x373   : > { %v2125_v14 = vadd.f32 %v5028_v19, %v2086_v24  ;;  %v2087_v0 = vmul.f32 %v2623_v28, %v5021_v15  ;;  %v2025_v60 = vpop.f32.mrb[27].mxu1 }
 0x374   : > { %v2123_v45 = vadd.f32 %v5028_v19, %v2084_v59  ;;  %v2085_v4 = vmul.f32 %v5021_v15, %v2025_v60 }
 0x375   : > { %v2224_v25 = vadd.f32 %v2192_v20, %v2125_v14  ;;  %v2126_v53 = vadd.f32 %v5028_v19, %v2087_v0 }
 0x376   : > { %v2222_v51 = vadd.f32 %v2190_v49, %v2123_v45  ;;  %v2124_v55 = vadd.f32 %v5028_v19, %v2085_v4 }
 0x377   : > { %2256 = vst [vmem:[%s5050_s2 + $0xd0] sm:$0xff] %v2224_v25  ;;  %v2225_v34 = vadd.f32 %v2193_v2, %v2126_v53 }
 0x378   : > { %2254 = vst [vmem:[%s5050_s2 + $0xc0] sm:$0xff] %v2222_v51  ;;  %v2223_v21 = vadd.f32 %v2191_v54, %v2124_v55 }
 0x379   : > { %v2626_v7 = vpop.f32.mrb[28].mxu1  ;;  %2257 = vst [vmem:[%s5050_s2 + $0xd8] sm:$0xff] %v2225_v34 }
 0x37a   : > { %v2090_v29 = vmul.f32 %v2626_v7, %v5021_v15  ;;  %v2038_v50 = vpop.f32.mrb[29].mxu1  ;;  %2255 = vst [vmem:[%s5050_s2 + $0xc8] sm:$0xff] %v2223_v21 }
 0x37b   : > { %v2088_v63 = vmul.f32 %v5021_v15, %v2038_v50  ;;  %v2627_v38 = vpop.f32.mrb[30].mxu1 }
 0x37c   : > { %v2129_v57 = vadd.f32 %v5028_v19, %v2090_v29  ;;  %v2091_v47 = vmul.f32 %v2627_v38, %v5021_v15  ;;  %v2041_v32 = vpop.f32.mrb[31].mxu1 }
 0x37d   : > { %v2127_v23 = vadd.f32 %v5028_v19, %v2088_v63  ;;  %v2089_v27 = vmul.f32 %v5021_v15, %v2041_v32 }
 0x37e   : > { %v2228_v18 = vadd.f32 %v2196_v12, %v2129_v57  ;;  %v2130_v56 = vadd.f32 %v5028_v19, %v2091_v47 }
 0x37f   : > { %v2226_v22 = vadd.f32 %v2194_v17, %v2127_v23  ;;  %v2128_v13 = vadd.f32 %v5028_v19, %v2089_v27 }
 0x380   : > { %2260 = vst [vmem:[%s5050_s2 + $0xf0] sm:$0xff] %v2228_v18  ;;  %v2229_v9 = vadd.f32 %v2197_v26, %v2130_v56 }
 0x381   : > { %2258 = vst [vmem:[%s5050_s2 + $0xe0] sm:$0xff] %v2226_v22  ;;  %v2227_v15 = vadd.f32 %v2195_v35, %v2128_v13 }
 0x382   : > { %2261 = vst [vmem:[%s5050_s2 + $0xf8] sm:$0xff] %v2229_v9 }
 0x383   : > { %2259 = vst [vmem:[%s5050_s2 + $0xe8] sm:$0xff] %v2227_v15 }
 0x384   : > { %2970 = shalt.err (!%p2967_p5)
}
 0x385   : > { %s2971_s26 = scalar_lea.hbm %s5214_s28, 4096  ;;  %s2975_s2 = scalar_lea.hbm %s5630_s7, 16384 }
 0x386   : > { %p2972_p8 = scmp.ne.s32.totalorder %s5214_s28, %s2971_s26  ;;  %p2976_p6 = scmp.lt.u32.totalorder %s5214_s28, %s5630_s7 }
 0x387   : > { %p2977_p10 = scmp.lt.u32.totalorder %s2975_s2, %s2971_s26  ;;  %p2979_p4 = scmp.lt.u32.totalorder %s2971_s26, %s5214_s28 }
 0x388   : > { %p2973_p12 = pnand %p2972_p8, %p5631_p3 }
 0x389   : > { %p2978_p1 = por %p2977_p10, %p2976_p6 }
 0x38a   : > { %p2974_p2 = pneg %p2973_p12 }
 0x38b   : > { %p2980_p7 = por %p2979_p4, %p2978_p1 }
 0x38d   : > { %p2981_p9 = pnand %p2980_p7, %p2974_p2 }
 0x38f   : > { %2984 = shalt.err (!%p2981_p9)
}
 0x390   : > { %s3098_s12 = smov 128   ;;  %s3099_s11 = smov 8  }
 0x391   : > { %2645 = dma.vmem_to_hbm [thread:$0]  (%p5631_p3), %s5208_s5, 4096, %s5214_s28, %s5220_s17, %s3098_s12, %s3098_s12, %s3099_s11  }
 0x392 PF: > { %s5632_s18 = sld [smem:[#allocation15_spill]]  ;;  %s5633_s23 = sld [smem:[#allocation19_spill]] }
 0x393   : > { %p2672_p13 = scmp.ge.s32.totalorder %s3087_s15, 2 }
 0x398   : > { %s2294_s8 = sand.u32 1, %s5632_s18   ;;  %p5634_p11 = scmp.ne.s32.totalorder %s5633_s23, 0 }
 0x399   : > { %s2295_s30 = scalar_lea.sflag [#allocation4], %s2294_s8 }
 0x39a   : > { %p2662_p0 = pnand %p2672_p13, %p5634_p11 }
 0x39c   : > { %3042 = dma.done.wait (!%p2662_p0), %s2295_s30, 4096  }
 0x39d   : > { %3044 = vsyncadd (!%p2662_p0), %s2295_s30, 4294963200  ;;  %s26_s15 = sadd.s32 1, %s3087_s15   ;;  %s5635_s27 = sld [smem:[#allocation16_spill]] }
 0x39e   : > { %p23_p5 = scmp.ge.s32.totalorder %s26_s15, 6   ;;  %s5636_s5 = sld [smem:[#allocation20_spill]] }
 0x39f   : > { %s5637_s20 = sld [smem:[#allocation21_spill]]  ;;  %s5638_s28 = smov %s3055_s29 }
 0x3a0   : > { %s5639_s29 = smov %s3339_s1  ;;  %s5640_s30 = smov %s3063_s9 }
 0x3a1   : > { %s5641_s9 = smov %s3067_s10  ;;  %s5642_s10 = smov %s3334_s25 }
 0x3a2   : > { %s5643_s11 = smov %s3079_s13  ;;  %s5644_s12 = smov %s3083_s14 }
 0x3a3   :  { %25 = sbr.rel (!%p23_p5) target bundleno = 18 (0x12), region = 110 }
 0x3a4   : > { %s5645_s13 = smov %s5636_s5 }
 0x3a5   : > { %s5646_s14 = smov %s5637_s20 }
 0x3aa   :  { %2300 = vsyncpa [#allocation3], 1 }
 0x3ab   :  { %2302 = vsyncpa [#allocation3 + $0x1], 1 }
 0x3ac   :  { %2303 = vsyncpa [#allocation6], 1 }
 0x3ad   :  { %2304 = vsyncpa [#allocation9], 1 }
 0x3ae   :  { %2305 = vsyncpa [#allocation4], 1 }
 0x3af   :  { %2307 = vsyncpa [#allocation4 + $0x1], 1 }

</bundles_post_ra>
